<compile_context>
chip_gen: v7x
topology: tpu7x:2x2x1
jax: 0.10.0
libtpu: 0.0.40
codegen_flags: <defaults>
</compile_context>

<pallas_src>
import functools

import jax
import jax.numpy as jnp
from jax.experimental import pallas as pl
from jax.experimental.pallas import tpu as pltpu


def _attn_block_kernel(xq_ref, xkv_ref, wq_ref, wk_ref, wv_ref, wo_ref,
                       bq_ref, bk_ref, bv_ref, bo_ref, gamma_ref, beta_ref,
                       o_ref,
                       xqt_scr, q_scr, k_scr, v_scr, m_scr, l_scr, acc_scr,
                       *, nheads, eps):
    """Grid = (batch, q_tile, kv_tile); kv_tile is the (arbitrary) reduction axis."""
    ki = pl.program_id(2)
    nk = pl.num_programs(2)

    _, tq, D = acc_scr.shape                  # (nheads, tq, D)

    # ---- first kv step of this (batch, q-tile): project Q, reset softmax state ----
    @pl.when(ki == 0)
    def _init():
        xq = jnp.transpose(xq_ref[0], (1, 0))                        # (tq, C), one XLU transpose
        xqt_scr[...] = xq                                            # cached for the residual path
        for h in range(nheads):                                      # static unroll over heads
            qh = jnp.dot(xq, wq_ref[h], preferred_element_type=jnp.float32)
            q_scr[h] = (qh + bq_ref[h]).astype(q_scr.dtype)          # 1/sqrt(D) folded into Wq/bq
        m_scr[...] = jnp.full(m_scr.shape, -jnp.inf, dtype=m_scr.dtype)
        l_scr[...] = jnp.zeros(l_scr.shape, dtype=l_scr.dtype)
        acc_scr[...] = jnp.zeros(acc_scr.shape, dtype=acc_scr.dtype)

    # ---- project K / V for this kv tile (per-head weights pre-split on host) ----
    xkv = jnp.transpose(xkv_ref[0], (1, 0))                          # (tk, C)
    for h in range(nheads):
        kh = jnp.dot(xkv, wk_ref[h], preferred_element_type=jnp.float32)
        vh = jnp.dot(xkv, wv_ref[h], preferred_element_type=jnp.float32)
        k_scr[h] = (kh + bk_ref[h]).astype(k_scr.dtype)
        v_scr[h] = (vh + bv_ref[h]).astype(v_scr.dtype)

    # ---- head-batched online-softmax attention update ----
    q = q_scr[...]                                                   # (nh, tq, D)
    k = k_scr[...]                                                   # (nh, tk, D)
    v = v_scr[...]                                                   # (nh, tk, D)

    # scores: contract D of q with D of k (RHS-transposed contraction, no k.T)
    s = jax.lax.dot_general(q, k, (((2,), (2,)), ((0,), (0,))),
                            preferred_element_type=jnp.float32)      # (nh, tq, tk)
    m_prev = m_scr[...]
    m_new = jnp.maximum(m_prev, jnp.max(s, axis=-1, keepdims=True))
    alpha = jnp.exp(m_prev - m_new)
    p = jnp.exp(s - m_new)
    l_scr[...] = alpha * l_scr[...] + jnp.sum(p, axis=-1, keepdims=True)
    pv = jax.lax.dot_general(p.astype(v.dtype), v, (((2,), (1,)), ((0,), (0,))),
                             preferred_element_type=jnp.float32)     # (nh, tq, D)
    acc_scr[...] = alpha * acc_scr[...] + pv
    m_scr[...] = m_new

    # ---- last kv step: finalize softmax, output projection, residual, LayerNorm ----
    @pl.when(ki == nk - 1)
    def _finalize():
        inv_l = pl.reciprocal(l_scr[...], approx=True)               # EUP, not VPU
        ctx = (acc_scr[...] * inv_l).astype(q_scr.dtype)             # (nh, tq, D)
        # TODO(synk): Dropout(0.2) is identity in eval mode; training-mode dropout omitted.
        y = xqt_scr[...].astype(jnp.float32) + bo_ref[...]           # residual + out-proj bias
        for h in range(nheads):                                      # per-head out-proj, summed
            y = y + jnp.dot(ctx[h], wo_ref[h], preferred_element_type=jnp.float32)
        mean = jnp.mean(y, axis=-1, keepdims=True)
        var = jnp.mean((y - mean) ** 2, axis=-1, keepdims=True)
        yn = (y - mean) * jax.lax.rsqrt(var + eps)
        yn = yn * gamma_ref[...] + beta_ref[...]
        o_ref[0] = jnp.transpose(yn, (1, 0)).astype(o_ref.dtype)     # write as (C, tq)


def _pick_tile(s, candidates=(256, 128)):
    for t in candidates:
        if s >= t and s % t == 0:
            return t
    return s                                  # small / odd S: one full-size tile


def attn_block(x_nchw, params, nheads):
    """y = LayerNorm(MHA(x, x, x) + x) over tokens S = H*W, embed dim C (NCHW in/out)."""
    B, C, H, W = x_nchw.shape
    S = H * W
    assert C % nheads == 0
    D = C // nheads
    dtype = x_nchw.dtype
    scale = 1.0 / float(D) ** 0.5

    in_w, in_b, out_w, out_b, gamma, beta = params

    # Host-side (free) weight re-layouts: split the packed in-projection into
    # per-head (nheads, C, D) operands so the kernel never slices along lanes.
    wq, wk, wv = in_w[:C], in_w[C:2 * C], in_w[2 * C:]
    bq, bk, bv = in_b[:C], in_b[C:2 * C], in_b[2 * C:]

    def split_in(w, s=1.0):   # (C_out, C_in) -> (nheads, C_in, D): x @ w_h == (x @ w.T)[:, h*D:(h+1)*D]
        return (jnp.transpose(w.reshape(nheads, D, C), (0, 2, 1)) * s).astype(dtype)

    wq_h = split_in(wq, scale)                            # softmax scale folded into Wq
    wk_h, wv_h = split_in(wk), split_in(wv)
    wo_h = jnp.transpose(out_w, (1, 0)).reshape(nheads, D, C).astype(dtype)
    bq_h = (bq * scale).reshape(nheads, 1, D).astype(jnp.float32)   # ... and into bq
    bk_h = bk.reshape(nheads, 1, D).astype(jnp.float32)
    bv_h = bv.reshape(nheads, 1, D).astype(jnp.float32)
    bo_r = out_b.reshape(1, C).astype(jnp.float32)
    gamma_r = gamma.reshape(1, C).astype(jnp.float32)
    beta_r = beta.reshape(1, C).astype(jnp.float32)

    # Keep x in its native (B, C, S) layout; NCHW <-> token transposes are fused
    # into the kernel (per-tile XLU transposes instead of HBM round trips).
    x_bcs = x_nchw.reshape(B, C, S)

    tq = _pick_tile(S)
    tk = _pick_tile(S)
    nq, nk = S // tq, S // tk

    const3 = lambda shape: pl.BlockSpec(shape, lambda b, qi, ki: (0, 0, 0))
    const2 = lambda shape: pl.BlockSpec(shape, lambda b, qi, ki: (0, 0))

    out = pl.pallas_call(
        functools.partial(_attn_block_kernel, nheads=nheads, eps=1e-5),
        out_shape=jax.ShapeDtypeStruct((B, C, S), dtype),
        grid_spec=pltpu.PrefetchScalarGridSpec(
            num_scalar_prefetch=0,
            grid=(B, nq, nk),
            in_specs=[
                pl.BlockSpec((1, C, tq), lambda b, qi, ki: (b, 0, qi)),   # x, query tile
                pl.BlockSpec((1, C, tk), lambda b, qi, ki: (b, 0, ki)),   # x, key/value tile
                const3((nheads, C, D)),                                   # Wq per head (pre-scaled)
                const3((nheads, C, D)),                                   # Wk per head
                const3((nheads, C, D)),                                   # Wv per head
                const3((nheads, D, C)),                                   # Wo per head
                const3((nheads, 1, D)),                                   # bq (pre-scaled)
                const3((nheads, 1, D)),                                   # bk
                const3((nheads, 1, D)),                                   # bv
                const2((1, C)),                                           # bo
                const2((1, C)),                                           # LN gamma
                const2((1, C)),                                           # LN beta
            ],
            out_specs=pl.BlockSpec((1, C, tq), lambda b, qi, ki: (b, 0, qi)),
            scratch_shapes=[
                pltpu.VMEM((tq, C), dtype),                 # transposed x query tile (residual)
                pltpu.VMEM((nheads, tq, D), dtype),         # Q (scaled), resident per q-tile
                pltpu.VMEM((nheads, tk, D), dtype),         # K tile
                pltpu.VMEM((nheads, tk, D), dtype),         # V tile
                pltpu.VMEM((nheads, tq, 1), jnp.float32),   # running max
                pltpu.VMEM((nheads, tq, 1), jnp.float32),   # running denominator
                pltpu.VMEM((nheads, tq, D), jnp.float32),   # context accumulator
            ],
        ),
        compiler_params=pltpu.CompilerParams(
            dimension_semantics=("parallel", "parallel", "arbitrary"),
            vmem_limit_bytes=48 * 1024 * 1024,    # explicit budget with headroom (v7x: 64 MiB/TC)
        ),
    )(x_bcs, x_bcs, wq_h, wk_h, wv_h, wo_h, bq_h, bk_h, bv_h, bo_r, gamma_r, beta_r)

    return out.reshape(B, C, H, W)


def attn_block_reference(x_nchw, params, nheads):
    """Pure-JAX reference matching the PyTorch module (eval mode)."""
    B, C, H, W = x_nchw.shape
    S = H * W
    D = C // nheads
    in_w, in_b, out_w, out_b, gamma, beta = params
    x = jnp.transpose(x_nchw.reshape(B, C, S), (0, 2, 1)).astype(jnp.float32)
    wq, wk, wv = in_w[:C], in_w[C:2 * C], in_w[2 * C:]
    bq, bk, bv = in_b[:C], in_b[C:2 * C], in_b[2 * C:]
    q = x @ wq.T + bq
    k = x @ wk.T + bk
    v = x @ wv.T + bv
    split = lambda t: jnp.transpose(t.reshape(B, S, nheads, D), (0, 2, 1, 3))
    qh, kh, vh = split(q) * (1.0 / D ** 0.5), split(k), split(v)
    p = jax.nn.softmax(jnp.einsum('bhqd,bhkd->bhqk', qh, kh), axis=-1)
    ctx = jnp.einsum('bhqk,bhkd->bhqd', p, vh)
    ctx = jnp.transpose(ctx, (0, 2, 1, 3)).reshape(B, S, C)
    y = ctx @ out_w.T + out_b + x
    mean = y.mean(-1, keepdims=True)
    var = ((y - mean) ** 2).mean(-1, keepdims=True)
    y = (y - mean) * jax.lax.rsqrt(var + 1e-5) * gamma + beta
    return jnp.transpose(y, (0, 2, 1)).reshape(B, C, H, W).astype(x_nchw.dtype)


def init_params(key, n, dtype=jnp.float32):
    """Deterministic synthetic params mirroring nn.MultiheadAttention / nn.LayerNorm."""
    k1, k2, k3 = jax.random.split(key, 3)
    in_proj_weight = jax.random.normal(k1, (3 * n, n), dtype) * (1.0 / n ** 0.5)
    in_proj_bias = jnp.zeros((3 * n,), dtype)
    out_proj_weight = jax.random.normal(k2, (n, n), dtype) * (1.0 / n ** 0.5)
    out_proj_bias = jax.random.normal(k3, (n,), dtype) * 0.01
    gamma = jnp.ones((n,), dtype)
    beta = jnp.zeros((n,), dtype)
    return (in_proj_weight, in_proj_bias, out_proj_weight, out_proj_bias, gamma, beta)


if __name__ == "__main__":
    B, C, H, W = 2, 32, 4, 4        # small shapes; C plays the role of n=512
    NHEADS = 4                      # C % NHEADS == 0

    key = jax.random.PRNGKey(0)
    kx, kp = jax.random.split(key)
    x = jax.random.normal(kx, (B, C, H, W), jnp.float32)
    params = init_params(kp, C)

    y = jax.jit(functools.partial(attn_block, nheads=NHEADS))(x, params)
    jax.block_until_ready(y)
    assert y.shape == x.shape and y.dtype == x.dtype

    y_ref = attn_block_reference(x, params, NHEADS)
    assert bool(jnp.all(jnp.isfinite(y)))
    assert bool(jnp.allclose(y, y_ref, atol=3e-2, rtol=3e-2)), (
        float(jnp.max(jnp.abs(y - y_ref))))
    print("KERNEL_OK")
</pallas_src>

<mosaic_0001>
module attributes {stable_mosaic.version = 11 : i64} {
  func.func @_attn_block_kernel(%arg0: i32, %arg1: i32, %arg2: i32, %arg3: memref<1x32x16xf32, #tpu.memory_space<vmem>>, %arg4: memref<1x32x16xf32, #tpu.memory_space<vmem>>, %arg5: memref<4x32x8xf32, #tpu.memory_space<vmem>>, %arg6: memref<4x32x8xf32, #tpu.memory_space<vmem>>, %arg7: memref<4x32x8xf32, #tpu.memory_space<vmem>>, %arg8: memref<4x8x32xf32, #tpu.memory_space<vmem>>, %arg9: memref<4x1x8xf32, #tpu.memory_space<vmem>>, %arg10: memref<4x1x8xf32, #tpu.memory_space<vmem>>, %arg11: memref<4x1x8xf32, #tpu.memory_space<vmem>>, %arg12: memref<1x32xf32, #tpu.memory_space<vmem>>, %arg13: memref<1x32xf32, #tpu.memory_space<vmem>>, %arg14: memref<1x32xf32, #tpu.memory_space<vmem>>, %arg15: memref<1x32x16xf32, #tpu.memory_space<vmem>>, %arg16: memref<16x32xf32, #tpu.memory_space<vmem>>, %arg17: memref<4x16x8xf32, #tpu.memory_space<vmem>>, %arg18: memref<4x16x8xf32, #tpu.memory_space<vmem>>, %arg19: memref<4x16x8xf32, #tpu.memory_space<vmem>>, %arg20: memref<4x16x1xf32, #tpu.memory_space<vmem>>, %arg21: memref<4x16x1xf32, #tpu.memory_space<vmem>>, %arg22: memref<4x16x8xf32, #tpu.memory_space<vmem>>) attributes {dimension_semantics = [#tpu.dimension_semantics<parallel>, #tpu.dimension_semantics<parallel>, #tpu.dimension_semantics<arbitrary>], iteration_bounds = array<i64: 2, 1, 1>, scalar_prefetch = 0 : i64, scratch_operands = 7 : i64, tpu.core_type = #tpu.core_type<tc>, window_params = [{transform_indices = @transform_0, window_bounds = array<i64: 1, 32, 16>}, {transform_indices = @transform_1, window_bounds = array<i64: 1, 32, 16>}, {pipeline_mode = #tpu.pipeline_mode<synchronous>, transform_indices = @transform_2, window_bounds = array<i64: 4, 32, 8>}, {pipeline_mode = #tpu.pipeline_mode<synchronous>, transform_indices = @transform_3, window_bounds = array<i64: 4, 32, 8>}, {pipeline_mode = #tpu.pipeline_mode<synchronous>, transform_indices = @transform_4, window_bounds = array<i64: 4, 32, 8>}, {pipeline_mode = #tpu.pipeline_mode<synchronous>, transform_indices = @transform_5, window_bounds = array<i64: 4, 8, 32>}, {pipeline_mode = #tpu.pipeline_mode<synchronous>, transform_indices = @transform_6, window_bounds = array<i64: 4, 1, 8>}, {pipeline_mode = #tpu.pipeline_mode<synchronous>, transform_indices = @transform_7, window_bounds = array<i64: 4, 1, 8>}, {pipeline_mode = #tpu.pipeline_mode<synchronous>, transform_indices = @transform_8, window_bounds = array<i64: 4, 1, 8>}, {pipeline_mode = #tpu.pipeline_mode<synchronous>, transform_indices = @transform_9, window_bounds = array<i64: 1, 32>}, {pipeline_mode = #tpu.pipeline_mode<synchronous>, transform_indices = @transform_10, window_bounds = array<i64: 1, 32>}, {pipeline_mode = #tpu.pipeline_mode<synchronous>, transform_indices = @transform_11, window_bounds = array<i64: 1, 32>}, {transform_indices = @transform_12, window_bounds = array<i64: 1, 32, 16>}]} {
    %c0_i32 = arith.constant 0 : i32
    %0 = arith.cmpi eq, %arg2, %c0_i32 : i32
    %1 = arith.extui %0 : i1 to i32
    %c0_i32_0 = arith.constant 0 : i32
    %2 = arith.cmpi ne, %1, %c0_i32_0 : i32
    scf.if %2 {
      %c0_112 = arith.constant 0 : index
      %c0_113 = arith.constant 0 : index
      %c0_114 = arith.constant 0 : index
      %115 = vector.load %arg3[%c0_112, %c0_113, %c0_114] : memref<1x32x16xf32, #tpu.memory_space<vmem>>, vector<1x32x16xf32>
      %116 = vector.shape_cast %115 : vector<1x32x16xf32> to vector<32x16xf32>
      %117 = tpu.transpose %116, [1, 0] : vector<32x16xf32> -> vector<16x32xf32>
      %c0_115 = arith.constant 0 : index
      %c0_116 = arith.constant 0 : index
      %118 = vector.load %arg16[%c0_115, %c0_116] : memref<16x32xf32, #tpu.memory_space<vmem>>, vector<16x32xf32>
      tpu.vector_store %arg16[%c0_115, %c0_116], %117 {strides = array<i32>} : memref<16x32xf32, #tpu.memory_space<vmem>>, vector<16x32xf32>,
      %c0_117 = arith.constant 0 : index
      %c0_118 = arith.constant 0 : index
      %c0_119 = arith.constant 0 : index
      %119 = vector.load %arg5[%c0_117, %c0_118, %c0_119] : memref<4x32x8xf32, #tpu.memory_space<vmem>>, vector<1x32x8xf32>
      %120 = vector.shape_cast %119 : vector<1x32x8xf32> to vector<32x8xf32>
      %cst_120 = arith.constant dense<0.000000e+00> : vector<16x8xf32>
      %121 = tpu.matmul %117, %120, %cst_120 {dimension_numbers = #tpu.dot_dimension_numbers<[1], [0], [0], [1], [0, 0, 1, 1], [], []>} : vector<16x32xf32>, vector<32x8xf32>, vector<16x8xf32> -> vector<16x8xf32>
      %c0_121 = arith.constant 0 : index
      %c0_122 = arith.constant 0 : index
      %c0_123 = arith.constant 0 : index
      %122 = vector.load %arg9[%c0_121, %c0_122, %c0_123] : memref<4x1x8xf32, #tpu.memory_space<vmem>>, vector<1x1x8xf32>
      %123 = vector.shape_cast %122 : vector<1x1x8xf32> to vector<1x8xf32>
      %124 = vector.broadcast %123 : vector<1x8xf32> to vector<16x8xf32>
      %125 = arith.addf %121, %124 : vector<16x8xf32>
      %c0_124 = arith.constant 0 : index
      %c0_125 = arith.constant 0 : index
      %c0_126 = arith.constant 0 : index
      %126 = vector.load %arg17[%c0_124, %c0_125, %c0_126] : memref<4x16x8xf32, #tpu.memory_space<vmem>>, vector<1x16x8xf32>
      %127 = vector.shape_cast %126 : vector<1x16x8xf32> to vector<16x8xf32>
      %128 = vector.shape_cast %125 : vector<16x8xf32> to vector<1x16x8xf32>
      tpu.vector_store %arg17[%c0_124, %c0_125, %c0_126], %128 {strides = array<i32>} : memref<4x16x8xf32, #tpu.memory_space<vmem>>, vector<1x16x8xf32>,
      %c1_127 = arith.constant 1 : index
      %c0_128 = arith.constant 0 : index
      %c0_129 = arith.constant 0 : index
      %129 = vector.load %arg5[%c1_127, %c0_128, %c0_129] : memref<4x32x8xf32, #tpu.memory_space<vmem>>, vector<1x32x8xf32>
      %130 = vector.shape_cast %129 : vector<1x32x8xf32> to vector<32x8xf32>
      %cst_130 = arith.constant dense<0.000000e+00> : vector<16x8xf32>
      %131 = tpu.matmul %117, %130, %cst_130 {dimension_numbers = #tpu.dot_dimension_numbers<[1], [0], [0], [1], [0, 0, 1, 1], [], []>} : vector<16x32xf32>, vector<32x8xf32>, vector<16x8xf32> -> vector<16x8xf32>
      %c1_131 = arith.constant 1 : index
      %c0_132 = arith.constant 0 : index
      %c0_133 = arith.constant 0 : index
      %132 = vector.load %arg9[%c1_131, %c0_132, %c0_133] : memref<4x1x8xf32, #tpu.memory_space<vmem>>, vector<1x1x8xf32>
      %133 = vector.shape_cast %132 : vector<1x1x8xf32> to vector<1x8xf32>
      %134 = vector.broadcast %133 : vector<1x8xf32> to vector<16x8xf32>
      %135 = arith.addf %131, %134 : vector<16x8xf32>
      %c1_134 = arith.constant 1 : index
      %c0_135 = arith.constant 0 : index
      %c0_136 = arith.constant 0 : index
      %136 = vector.load %arg17[%c1_134, %c0_135, %c0_136] : memref<4x16x8xf32, #tpu.memory_space<vmem>>, vector<1x16x8xf32>
      %137 = vector.shape_cast %136 : vector<1x16x8xf32> to vector<16x8xf32>
      %138 = vector.shape_cast %135 : vector<16x8xf32> to vector<1x16x8xf32>
      tpu.vector_store %arg17[%c1_134, %c0_135, %c0_136], %138 {strides = array<i32>} : memref<4x16x8xf32, #tpu.memory_space<vmem>>, vector<1x16x8xf32>,
      %c2_137 = arith.constant 2 : index
      %c0_138 = arith.constant 0 : index
      %c0_139 = arith.constant 0 : index
      %139 = vector.load %arg5[%c2_137, %c0_138, %c0_139] : memref<4x32x8xf32, #tpu.memory_space<vmem>>, vector<1x32x8xf32>
      %140 = vector.shape_cast %139 : vector<1x32x8xf32> to vector<32x8xf32>
      %cst_140 = arith.constant dense<0.000000e+00> : vector<16x8xf32>
      %141 = tpu.matmul %117, %140, %cst_140 {dimension_numbers = #tpu.dot_dimension_numbers<[1], [0], [0], [1], [0, 0, 1, 1], [], []>} : vector<16x32xf32>, vector<32x8xf32>, vector<16x8xf32> -> vector<16x8xf32>
      %c2_141 = arith.constant 2 : index
      %c0_142 = arith.constant 0 : index
      %c0_143 = arith.constant 0 : index
      %142 = vector.load %arg9[%c2_141, %c0_142, %c0_143] : memref<4x1x8xf32, #tpu.memory_space<vmem>>, vector<1x1x8xf32>
      %143 = vector.shape_cast %142 : vector<1x1x8xf32> to vector<1x8xf32>
      %144 = vector.broadcast %143 : vector<1x8xf32> to vector<16x8xf32>
      %145 = arith.addf %141, %144 : vector<16x8xf32>
      %c2_144 = arith.constant 2 : index
      %c0_145 = arith.constant 0 : index
      %c0_146 = arith.constant 0 : index
      %146 = vector.load %arg17[%c2_144, %c0_145, %c0_146] : memref<4x16x8xf32, #tpu.memory_space<vmem>>, vector<1x16x8xf32>
      %147 = vector.shape_cast %146 : vector<1x16x8xf32> to vector<16x8xf32>
      %148 = vector.shape_cast %145 : vector<16x8xf32> to vector<1x16x8xf32>
      tpu.vector_store %arg17[%c2_144, %c0_145, %c0_146], %148 {strides = array<i32>} : memref<4x16x8xf32, #tpu.memory_space<vmem>>, vector<1x16x8xf32>,
      %c3_147 = arith.constant 3 : index
      %c0_148 = arith.constant 0 : index
      %c0_149 = arith.constant 0 : index
      %149 = vector.load %arg5[%c3_147, %c0_148, %c0_149] : memref<4x32x8xf32, #tpu.memory_space<vmem>>, vector<1x32x8xf32>
      %150 = vector.shape_cast %149 : vector<1x32x8xf32> to vector<32x8xf32>
      %cst_150 = arith.constant dense<0.000000e+00> : vector<16x8xf32>
      %151 = tpu.matmul %117, %150, %cst_150 {dimension_numbers = #tpu.dot_dimension_numbers<[1], [0], [0], [1], [0, 0, 1, 1], [], []>} : vector<16x32xf32>, vector<32x8xf32>, vector<16x8xf32> -> vector<16x8xf32>
      %c3_151 = arith.constant 3 : index
      %c0_152 = arith.constant 0 : index
      %c0_153 = arith.constant 0 : index
      %152 = vector.load %arg9[%c3_151, %c0_152, %c0_153] : memref<4x1x8xf32, #tpu.memory_space<vmem>>, vector<1x1x8xf32>
      %153 = vector.shape_cast %152 : vector<1x1x8xf32> to vector<1x8xf32>
      %154 = vector.broadcast %153 : vector<1x8xf32> to vector<16x8xf32>
      %155 = arith.addf %151, %154 : vector<16x8xf32>
      %c3_154 = arith.constant 3 : index
      %c0_155 = arith.constant 0 : index
      %c0_156 = arith.constant 0 : index
      %156 = vector.load %arg17[%c3_154, %c0_155, %c0_156] : memref<4x16x8xf32, #tpu.memory_space<vmem>>, vector<1x16x8xf32>
      %157 = vector.shape_cast %156 : vector<1x16x8xf32> to vector<16x8xf32>
      %158 = vector.shape_cast %155 : vector<16x8xf32> to vector<1x16x8xf32>
      tpu.vector_store %arg17[%c3_154, %c0_155, %c0_156], %158 {strides = array<i32>} : memref<4x16x8xf32, #tpu.memory_space<vmem>>, vector<1x16x8xf32>,
      %cst_157 = arith.constant 0xFF800000 : f32
      %159 = vector.broadcast %cst_157 : f32 to vector<4x16x1xf32>
      %c0_158 = arith.constant 0 : index
      %c0_159 = arith.constant 0 : index
      %c0_160 = arith.constant 0 : index
      %160 = vector.load %arg20[%c0_158, %c0_159, %c0_160] : memref<4x16x1xf32, #tpu.memory_space<vmem>>, vector<4x16x1xf32>
      tpu.vector_store %arg20[%c0_158, %c0_159, %c0_160], %159 {strides = array<i32>} : memref<4x16x1xf32, #tpu.memory_space<vmem>>, vector<4x16x1xf32>,
      %cst_161 = arith.constant 0.000000e+00 : f32
      %161 = vector.broadcast %cst_161 : f32 to vector<4x16x1xf32>
      %c0_162 = arith.constant 0 : index
      %c0_163 = arith.constant 0 : index
      %c0_164 = arith.constant 0 : index
      %162 = vector.load %arg21[%c0_162, %c0_163, %c0_164] : memref<4x16x1xf32, #tpu.memory_space<vmem>>, vector<4x16x1xf32>
      tpu.vector_store %arg21[%c0_162, %c0_163, %c0_164], %161 {strides = array<i32>} : memref<4x16x1xf32, #tpu.memory_space<vmem>>, vector<4x16x1xf32>,
      %cst_165 = arith.constant 0.000000e+00 : f32
      %163 = vector.broadcast %cst_165 : f32 to vector<4x16x8xf32>
      %c0_166 = arith.constant 0 : index
      %c0_167 = arith.constant 0 : index
      %c0_168 = arith.constant 0 : index
      %164 = vector.load %arg22[%c0_166, %c0_167, %c0_168] : memref<4x16x8xf32, #tpu.memory_space<vmem>>, vector<4x16x8xf32>
      tpu.vector_store %arg22[%c0_166, %c0_167, %c0_168], %163 {strides = array<i32>} : memref<4x16x8xf32, #tpu.memory_space<vmem>>, vector<4x16x8xf32>,
    } else {
    }
    %c0 = arith.constant 0 : index
    %c0_1 = arith.constant 0 : index
    %c0_2 = arith.constant 0 : index
    %3 = vector.load %arg4[%c0, %c0_1, %c0_2] : memref<1x32x16xf32, #tpu.memory_space<vmem>>, vector<1x32x16xf32>
    %4 = vector.shape_cast %3 : vector<1x32x16xf32> to vector<32x16xf32>
    %5 = tpu.transpose %4, [1, 0] : vector<32x16xf32> -> vector<16x32xf32>
    %c0_3 = arith.constant 0 : index
    %c0_4 = arith.constant 0 : index
    %c0_5 = arith.constant 0 : index
    %6 = vector.load %arg6[%c0_3, %c0_4, %c0_5] : memref<4x32x8xf32, #tpu.memory_space<vmem>>, vector<1x32x8xf32>
    %7 = vector.shape_cast %6 : vector<1x32x8xf32> to vector<32x8xf32>
    %cst = arith.constant dense<0.000000e+00> : vector<16x8xf32>
    %8 = tpu.matmul %5, %7, %cst {dimension_numbers = #tpu.dot_dimension_numbers<[1], [0], [0], [1], [0, 0, 1, 1], [], []>} : vector<16x32xf32>, vector<32x8xf32>, vector<16x8xf32> -> vector<16x8xf32>
    %c0_6 = arith.constant 0 : index
    %c0_7 = arith.constant 0 : index
    %c0_8 = arith.constant 0 : index
    %9 = vector.load %arg7[%c0_6, %c0_7, %c0_8] : memref<4x32x8xf32, #tpu.memory_space<vmem>>, vector<1x32x8xf32>
    %10 = vector.shape_cast %9 : vector<1x32x8xf32> to vector<32x8xf32>
    %cst_9 = arith.constant dense<0.000000e+00> : vector<16x8xf32>
    %11 = tpu.matmul %5, %10, %cst_9 {dimension_numbers = #tpu.dot_dimension_numbers<[1], [0], [0], [1], [0, 0, 1, 1], [], []>} : vector<16x32xf32>, vector<32x8xf32>, vector<16x8xf32> -> vector<16x8xf32>
    %c0_10 = arith.constant 0 : index
    %c0_11 = arith.constant 0 : index
    %c0_12 = arith.constant 0 : index
    %12 = vector.load %arg10[%c0_10, %c0_11, %c0_12] : memref<4x1x8xf32, #tpu.memory_space<vmem>>, vector<1x1x8xf32>
    %13 = vector.shape_cast %12 : vector<1x1x8xf32> to vector<1x8xf32>
    %14 = vector.broadcast %13 : vector<1x8xf32> to vector<16x8xf32>
    %15 = arith.addf %8, %14 : vector<16x8xf32>
    %c0_13 = arith.constant 0 : index
    %c0_14 = arith.constant 0 : index
    %c0_15 = arith.constant 0 : index
    %16 = vector.load %arg18[%c0_13, %c0_14, %c0_15] : memref<4x16x8xf32, #tpu.memory_space<vmem>>, vector<1x16x8xf32>
    %17 = vector.shape_cast %16 : vector<1x16x8xf32> to vector<16x8xf32>
    %18 = vector.shape_cast %15 : vector<16x8xf32> to vector<1x16x8xf32>
    tpu.vector_store %arg18[%c0_13, %c0_14, %c0_15], %18 {strides = array<i32>} : memref<4x16x8xf32, #tpu.memory_space<vmem>>, vector<1x16x8xf32>,
    %c0_16 = arith.constant 0 : index
    %c0_17 = arith.constant 0 : index
    %c0_18 = arith.constant 0 : index
    %19 = vector.load %arg11[%c0_16, %c0_17, %c0_18] : memref<4x1x8xf32, #tpu.memory_space<vmem>>, vector<1x1x8xf32>
    %20 = vector.shape_cast %19 : vector<1x1x8xf32> to vector<1x8xf32>
    %21 = vector.broadcast %20 : vector<1x8xf32> to vector<16x8xf32>
    %22 = arith.addf %11, %21 : vector<16x8xf32>
    %c0_19 = arith.constant 0 : index
    %c0_20 = arith.constant 0 : index
    %c0_21 = arith.constant 0 : index
    %23 = vector.load %arg19[%c0_19, %c0_20, %c0_21] : memref<4x16x8xf32, #tpu.memory_space<vmem>>, vector<1x16x8xf32>
    %24 = vector.shape_cast %23 : vector<1x16x8xf32> to vector<16x8xf32>
    %25 = vector.shape_cast %22 : vector<16x8xf32> to vector<1x16x8xf32>
    tpu.vector_store %arg19[%c0_19, %c0_20, %c0_21], %25 {strides = array<i32>} : memref<4x16x8xf32, #tpu.memory_space<vmem>>, vector<1x16x8xf32>,
    %c1 = arith.constant 1 : index
    %c0_22 = arith.constant 0 : index
    %c0_23 = arith.constant 0 : index
    %26 = vector.load %arg6[%c1, %c0_22, %c0_23] : memref<4x32x8xf32, #tpu.memory_space<vmem>>, vector<1x32x8xf32>
    %27 = vector.shape_cast %26 : vector<1x32x8xf32> to vector<32x8xf32>
    %cst_24 = arith.constant dense<0.000000e+00> : vector<16x8xf32>
    %28 = tpu.matmul %5, %27, %cst_24 {dimension_numbers = #tpu.dot_dimension_numbers<[1], [0], [0], [1], [0, 0, 1, 1], [], []>} : vector<16x32xf32>, vector<32x8xf32>, vector<16x8xf32> -> vector<16x8xf32>
    %c1_25 = arith.constant 1 : index
    %c0_26 = arith.constant 0 : index
    %c0_27 = arith.constant 0 : index
    %29 = vector.load %arg7[%c1_25, %c0_26, %c0_27] : memref<4x32x8xf32, #tpu.memory_space<vmem>>, vector<1x32x8xf32>
    %30 = vector.shape_cast %29 : vector<1x32x8xf32> to vector<32x8xf32>
    %cst_28 = arith.constant dense<0.000000e+00> : vector<16x8xf32>
    %31 = tpu.matmul %5, %30, %cst_28 {dimension_numbers = #tpu.dot_dimension_numbers<[1], [0], [0], [1], [0, 0, 1, 1], [], []>} : vector<16x32xf32>, vector<32x8xf32>, vector<16x8xf32> -> vector<16x8xf32>
    %c1_29 = arith.constant 1 : index
    %c0_30 = arith.constant 0 : index
    %c0_31 = arith.constant 0 : index
    %32 = vector.load %arg10[%c1_29, %c0_30, %c0_31] : memref<4x1x8xf32, #tpu.memory_space<vmem>>, vector<1x1x8xf32>
    %33 = vector.shape_cast %32 : vector<1x1x8xf32> to vector<1x8xf32>
    %34 = vector.broadcast %33 : vector<1x8xf32> to vector<16x8xf32>
    %35 = arith.addf %28, %34 : vector<16x8xf32>
    %c1_32 = arith.constant 1 : index
    %c0_33 = arith.constant 0 : index
    %c0_34 = arith.constant 0 : index
    %36 = vector.load %arg18[%c1_32, %c0_33, %c0_34] : memref<4x16x8xf32, #tpu.memory_space<vmem>>, vector<1x16x8xf32>
    %37 = vector.shape_cast %36 : vector<1x16x8xf32> to vector<16x8xf32>
    %38 = vector.shape_cast %35 : vector<16x8xf32> to vector<1x16x8xf32>
    tpu.vector_store %arg18[%c1_32, %c0_33, %c0_34], %38 {strides = array<i32>} : memref<4x16x8xf32, #tpu.memory_space<vmem>>, vector<1x16x8xf32>,
    %c1_35 = arith.constant 1 : index
    %c0_36 = arith.constant 0 : index
    %c0_37 = arith.constant 0 : index
    %39 = vector.load %arg11[%c1_35, %c0_36, %c0_37] : memref<4x1x8xf32, #tpu.memory_space<vmem>>, vector<1x1x8xf32>
    %40 = vector.shape_cast %39 : vector<1x1x8xf32> to vector<1x8xf32>
    %41 = vector.broadcast %40 : vector<1x8xf32> to vector<16x8xf32>
    %42 = arith.addf %31, %41 : vector<16x8xf32>
    %c1_38 = arith.constant 1 : index
    %c0_39 = arith.constant 0 : index
    %c0_40 = arith.constant 0 : index
    %43 = vector.load %arg19[%c1_38, %c0_39, %c0_40] : memref<4x16x8xf32, #tpu.memory_space<vmem>>, vector<1x16x8xf32>
    %44 = vector.shape_cast %43 : vector<1x16x8xf32> to vector<16x8xf32>
    %45 = vector.shape_cast %42 : vector<16x8xf32> to vector<1x16x8xf32>
    tpu.vector_store %arg19[%c1_38, %c0_39, %c0_40], %45 {strides = array<i32>} : memref<4x16x8xf32, #tpu.memory_space<vmem>>, vector<1x16x8xf32>,
    %c2 = arith.constant 2 : index
    %c0_41 = arith.constant 0 : index
    %c0_42 = arith.constant 0 : index
    %46 = vector.load %arg6[%c2, %c0_41, %c0_42] : memref<4x32x8xf32, #tpu.memory_space<vmem>>, vector<1x32x8xf32>
    %47 = vector.shape_cast %46 : vector<1x32x8xf32> to vector<32x8xf32>
    %cst_43 = arith.constant dense<0.000000e+00> : vector<16x8xf32>
    %48 = tpu.matmul %5, %47, %cst_43 {dimension_numbers = #tpu.dot_dimension_numbers<[1], [0], [0], [1], [0, 0, 1, 1], [], []>} : vector<16x32xf32>, vector<32x8xf32>, vector<16x8xf32> -> vector<16x8xf32>
    %c2_44 = arith.constant 2 : index
    %c0_45 = arith.constant 0 : index
    %c0_46 = arith.constant 0 : index
    %49 = vector.load %arg7[%c2_44, %c0_45, %c0_46] : memref<4x32x8xf32, #tpu.memory_space<vmem>>, vector<1x32x8xf32>
    %50 = vector.shape_cast %49 : vector<1x32x8xf32> to vector<32x8xf32>
    %cst_47 = arith.constant dense<0.000000e+00> : vector<16x8xf32>
    %51 = tpu.matmul %5, %50, %cst_47 {dimension_numbers = #tpu.dot_dimension_numbers<[1], [0], [0], [1], [0, 0, 1, 1], [], []>} : vector<16x32xf32>, vector<32x8xf32>, vector<16x8xf32> -> vector<16x8xf32>
    %c2_48 = arith.constant 2 : index
    %c0_49 = arith.constant 0 : index
    %c0_50 = arith.constant 0 : index
    %52 = vector.load %arg10[%c2_48, %c0_49, %c0_50] : memref<4x1x8xf32, #tpu.memory_space<vmem>>, vector<1x1x8xf32>
    %53 = vector.shape_cast %52 : vector<1x1x8xf32> to vector<1x8xf32>
    %54 = vector.broadcast %53 : vector<1x8xf32> to vector<16x8xf32>
    %55 = arith.addf %48, %54 : vector<16x8xf32>
    %c2_51 = arith.constant 2 : index
    %c0_52 = arith.constant 0 : index
    %c0_53 = arith.constant 0 : index
    %56 = vector.load %arg18[%c2_51, %c0_52, %c0_53] : memref<4x16x8xf32, #tpu.memory_space<vmem>>, vector<1x16x8xf32>
    %57 = vector.shape_cast %56 : vector<1x16x8xf32> to vector<16x8xf32>
    %58 = vector.shape_cast %55 : vector<16x8xf32> to vector<1x16x8xf32>
    tpu.vector_store %arg18[%c2_51, %c0_52, %c0_53], %58 {strides = array<i32>} : memref<4x16x8xf32, #tpu.memory_space<vmem>>, vector<1x16x8xf32>,
    %c2_54 = arith.constant 2 : index
    %c0_55 = arith.constant 0 : index
    %c0_56 = arith.constant 0 : index
    %59 = vector.load %arg11[%c2_54, %c0_55, %c0_56] : memref<4x1x8xf32, #tpu.memory_space<vmem>>, vector<1x1x8xf32>
    %60 = vector.shape_cast %59 : vector<1x1x8xf32> to vector<1x8xf32>
    %61 = vector.broadcast %60 : vector<1x8xf32> to vector<16x8xf32>
    %62 = arith.addf %51, %61 : vector<16x8xf32>
    %c2_57 = arith.constant 2 : index
    %c0_58 = arith.constant 0 : index
    %c0_59 = arith.constant 0 : index
    %63 = vector.load %arg19[%c2_57, %c0_58, %c0_59] : memref<4x16x8xf32, #tpu.memory_space<vmem>>, vector<1x16x8xf32>
    %64 = vector.shape_cast %63 : vector<1x16x8xf32> to vector<16x8xf32>
    %65 = vector.shape_cast %62 : vector<16x8xf32> to vector<1x16x8xf32>
    tpu.vector_store %arg19[%c2_57, %c0_58, %c0_59], %65 {strides = array<i32>} : memref<4x16x8xf32, #tpu.memory_space<vmem>>, vector<1x16x8xf32>,
    %c3 = arith.constant 3 : index
    %c0_60 = arith.constant 0 : index
    %c0_61 = arith.constant 0 : index
    %66 = vector.load %arg6[%c3, %c0_60, %c0_61] : memref<4x32x8xf32, #tpu.memory_space<vmem>>, vector<1x32x8xf32>
    %67 = vector.shape_cast %66 : vector<1x32x8xf32> to vector<32x8xf32>
    %cst_62 = arith.constant dense<0.000000e+00> : vector<16x8xf32>
    %68 = tpu.matmul %5, %67, %cst_62 {dimension_numbers = #tpu.dot_dimension_numbers<[1], [0], [0], [1], [0, 0, 1, 1], [], []>} : vector<16x32xf32>, vector<32x8xf32>, vector<16x8xf32> -> vector<16x8xf32>
    %c3_63 = arith.constant 3 : index
    %c0_64 = arith.constant 0 : index
    %c0_65 = arith.constant 0 : index
    %69 = vector.load %arg7[%c3_63, %c0_64, %c0_65] : memref<4x32x8xf32, #tpu.memory_space<vmem>>, vector<1x32x8xf32>
    %70 = vector.shape_cast %69 : vector<1x32x8xf32> to vector<32x8xf32>
    %cst_66 = arith.constant dense<0.000000e+00> : vector<16x8xf32>
    %71 = tpu.matmul %5, %70, %cst_66 {dimension_numbers = #tpu.dot_dimension_numbers<[1], [0], [0], [1], [0, 0, 1, 1], [], []>} : vector<16x32xf32>, vector<32x8xf32>, vector<16x8xf32> -> vector<16x8xf32>
    %c3_67 = arith.constant 3 : index
    %c0_68 = arith.constant 0 : index
    %c0_69 = arith.constant 0 : index
    %72 = vector.load %arg10[%c3_67, %c0_68, %c0_69] : memref<4x1x8xf32, #tpu.memory_space<vmem>>, vector<1x1x8xf32>
    %73 = vector.shape_cast %72 : vector<1x1x8xf32> to vector<1x8xf32>
    %74 = vector.broadcast %73 : vector<1x8xf32> to vector<16x8xf32>
    %75 = arith.addf %68, %74 : vector<16x8xf32>
    %c3_70 = arith.constant 3 : index
    %c0_71 = arith.constant 0 : index
    %c0_72 = arith.constant 0 : index
    %76 = vector.load %arg18[%c3_70, %c0_71, %c0_72] : memref<4x16x8xf32, #tpu.memory_space<vmem>>, vector<1x16x8xf32>
    %77 = vector.shape_cast %76 : vector<1x16x8xf32> to vector<16x8xf32>
    %78 = vector.shape_cast %75 : vector<16x8xf32> to vector<1x16x8xf32>
    tpu.vector_store %arg18[%c3_70, %c0_71, %c0_72], %78 {strides = array<i32>} : memref<4x16x8xf32, #tpu.memory_space<vmem>>, vector<1x16x8xf32>,
    %c3_73 = arith.constant 3 : index
    %c0_74 = arith.constant 0 : index
    %c0_75 = arith.constant 0 : index
    %79 = vector.load %arg11[%c3_73, %c0_74, %c0_75] : memref<4x1x8xf32, #tpu.memory_space<vmem>>, vector<1x1x8xf32>
    %80 = vector.shape_cast %79 : vector<1x1x8xf32> to vector<1x8xf32>
    %81 = vector.broadcast %80 : vector<1x8xf32> to vector<16x8xf32>
    %82 = arith.addf %71, %81 : vector<16x8xf32>
    %c3_76 = arith.constant 3 : index
    %c0_77 = arith.constant 0 : index
    %c0_78 = arith.constant 0 : index
    %83 = vector.load %arg19[%c3_76, %c0_77, %c0_78] : memref<4x16x8xf32, #tpu.memory_space<vmem>>, vector<1x16x8xf32>
    %84 = vector.shape_cast %83 : vector<1x16x8xf32> to vector<16x8xf32>
    %85 = vector.shape_cast %82 : vector<16x8xf32> to vector<1x16x8xf32>
    tpu.vector_store %arg19[%c3_76, %c0_77, %c0_78], %85 {strides = array<i32>} : memref<4x16x8xf32, #tpu.memory_space<vmem>>, vector<1x16x8xf32>,
    %c0_79 = arith.constant 0 : index
    %c0_80 = arith.constant 0 : index
    %c0_81 = arith.constant 0 : index
    %86 = vector.load %arg17[%c0_79, %c0_80, %c0_81] : memref<4x16x8xf32, #tpu.memory_space<vmem>>, vector<4x16x8xf32>
    %c0_82 = arith.constant 0 : index
    %c0_83 = arith.constant 0 : index
    %c0_84 = arith.constant 0 : index
    %87 = vector.load %arg18[%c0_82, %c0_83, %c0_84] : memref<4x16x8xf32, #tpu.memory_space<vmem>>, vector<4x16x8xf32>
    %c0_85 = arith.constant 0 : index
    %c0_86 = arith.constant 0 : index
    %c0_87 = arith.constant 0 : index
    %88 = vector.load %arg19[%c0_85, %c0_86, %c0_87] : memref<4x16x8xf32, #tpu.memory_space<vmem>>, vector<4x16x8xf32>
    %cst_88 = arith.constant dense<0.000000e+00> : vector<4x16x16xf32>
    %89 = tpu.matmul %86, %87, %cst_88 {dimension_numbers = #tpu.dot_dimension_numbers<[2], [2], [1], [1], [0, 0, 0, 1, 1, 1], [0], [0]>} : vector<4x16x8xf32>, vector<4x16x8xf32>, vector<4x16x16xf32> -> vector<4x16x16xf32>
    %c0_89 = arith.constant 0 : index
    %c0_90 = arith.constant 0 : index
    %c0_91 = arith.constant 0 : index
    %90 = vector.load %arg20[%c0_89, %c0_90, %c0_91] : memref<4x16x1xf32, #tpu.memory_space<vmem>>, vector<4x16x1xf32>
    %cst_92 = arith.constant dense<0xFF800000> : vector<4x16xf32>
    %91 = vector.multi_reduction <maximumf>, %89, %cst_92 [2] : vector<4x16x16xf32> to vector<4x16xf32>
    %92 = vector.shape_cast %91 : vector<4x16xf32> to vector<4x16x1xf32>
    %93 = arith.maximumf %90, %92 : vector<4x16x1xf32>
    %94 = arith.subf %90, %93 : vector<4x16x1xf32>
    %95 = math.exp %94 : vector<4x16x1xf32>
    %96 = vector.broadcast %93 : vector<4x16x1xf32> to vector<4x16x16xf32>
    %97 = arith.subf %89, %96 : vector<4x16x16xf32>
    %98 = math.exp %97 : vector<4x16x16xf32>
    %c0_93 = arith.constant 0 : index
    %c0_94 = arith.constant 0 : index
    %c0_95 = arith.constant 0 : index
    %99 = vector.load %arg21[%c0_93, %c0_94, %c0_95] : memref<4x16x1xf32, #tpu.memory_space<vmem>>, vector<4x16x1xf32>
    %100 = arith.mulf %95, %99 : vector<4x16x1xf32>
    %cst_96 = arith.constant dense<0.000000e+00> : vector<4x16xf32>
    %101 = vector.multi_reduction <add>, %98, %cst_96 [2] : vector<4x16x16xf32> to vector<4x16xf32>
    %102 = vector.shape_cast %101 : vector<4x16xf32> to vector<4x16x1xf32>
    %103 = arith.addf %100, %102 : vector<4x16x1xf32>
    %c0_97 = arith.constant 0 : index
    %c0_98 = arith.constant 0 : index
    %c0_99 = arith.constant 0 : index
    %104 = vector.load %arg21[%c0_97, %c0_98, %c0_99] : memref<4x16x1xf32, #tpu.memory_space<vmem>>, vector<4x16x1xf32>
    tpu.vector_store %arg21[%c0_97, %c0_98, %c0_99], %103 {strides = array<i32>} : memref<4x16x1xf32, #tpu.memory_space<vmem>>, vector<4x16x1xf32>,
    %cst_100 = arith.constant dense<0.000000e+00> : vector<4x16x8xf32>
    %105 = tpu.matmul %98, %88, %cst_100 {dimension_numbers = #tpu.dot_dimension_numbers<[2], [1], [1], [2], [0, 0, 0, 1, 1, 2], [0], [0]>} : vector<4x16x16xf32>, vector<4x16x8xf32>, vector<4x16x8xf32> -> vector<4x16x8xf32>
    %c0_101 = arith.constant 0 : index
    %c0_102 = arith.constant 0 : index
    %c0_103 = arith.constant 0 : index
    %106 = vector.load %arg22[%c0_101, %c0_102, %c0_103] : memref<4x16x8xf32, #tpu.memory_space<vmem>>, vector<4x16x8xf32>
    %107 = vector.broadcast %95 : vector<4x16x1xf32> to vector<4x16x8xf32>
    %108 = arith.mulf %107, %106 : vector<4x16x8xf32>
    %109 = arith.addf %108, %105 : vector<4x16x8xf32>
    %c0_104 = arith.constant 0 : index
    %c0_105 = arith.constant 0 : index
    %c0_106 = arith.constant 0 : index
    %110 = vector.load %arg22[%c0_104, %c0_105, %c0_106] : memref<4x16x8xf32, #tpu.memory_space<vmem>>, vector<4x16x8xf32>
    tpu.vector_store %arg22[%c0_104, %c0_105, %c0_106], %109 {strides = array<i32>} : memref<4x16x8xf32, #tpu.memory_space<vmem>>, vector<4x16x8xf32>,
    %c0_107 = arith.constant 0 : index
    %c0_108 = arith.constant 0 : index
    %c0_109 = arith.constant 0 : index
    %111 = vector.load %arg20[%c0_107, %c0_108, %c0_109] : memref<4x16x1xf32, #tpu.memory_space<vmem>>, vector<4x16x1xf32>
    tpu.vector_store %arg20[%c0_107, %c0_108, %c0_109], %93 {strides = array<i32>} : memref<4x16x1xf32, #tpu.memory_space<vmem>>, vector<4x16x1xf32>,
    %c0_i32_110 = arith.constant 0 : i32
    %112 = arith.cmpi eq, %arg2, %c0_i32_110 : i32
    %113 = arith.extui %112 : i1 to i32
    %c0_i32_111 = arith.constant 0 : i32
    %114 = arith.cmpi ne, %113, %c0_i32_111 : i32
    scf.if %114 {
      %c0_112 = arith.constant 0 : index
      %c0_113 = arith.constant 0 : index
      %c0_114 = arith.constant 0 : index
      %115 = vector.load %arg21[%c0_112, %c0_113, %c0_114] : memref<4x16x1xf32, #tpu.memory_space<vmem>>, vector<4x16x1xf32>
      %116 = tpu.reciprocal %115 {approx = true} : vector<4x16x1xf32> -> vector<4x16x1xf32>
      %c0_115 = arith.constant 0 : index
      %c0_116 = arith.constant 0 : index
      %c0_117 = arith.constant 0 : index
      %117 = vector.load %arg22[%c0_115, %c0_116, %c0_117] : memref<4x16x8xf32, #tpu.memory_space<vmem>>, vector<4x16x8xf32>
      %118 = vector.broadcast %116 : vector<4x16x1xf32> to vector<4x16x8xf32>
      %119 = arith.mulf %117, %118 : vector<4x16x8xf32>
      %c0_118 = arith.constant 0 : index
      %c0_119 = arith.constant 0 : index
      %120 = vector.load %arg16[%c0_118, %c0_119] : memref<16x32xf32, #tpu.memory_space<vmem>>, vector<16x32xf32>
      %c0_120 = arith.constant 0 : index
      %c0_121 = arith.constant 0 : index
      %121 = vector.load %arg12[%c0_120, %c0_121] : memref<1x32xf32, #tpu.memory_space<vmem>>, vector<1x32xf32>
      %122 = vector.broadcast %121 : vector<1x32xf32> to vector<16x32xf32>
      %123 = arith.addf %120, %122 : vector<16x32xf32>
      %124 = vector.extract_strided_slice %119 {offsets = [0, 0, 0], sizes = [1, 16, 8], strides = [1, 1, 1]} : vector<4x16x8xf32> to vector<1x16x8xf32>
      %125 = vector.shape_cast %124 : vector<1x16x8xf32> to vector<16x8xf32>
      %c0_122 = arith.constant 0 : index
      %c0_123 = arith.constant 0 : index
      %c0_124 = arith.constant 0 : index
      %126 = vector.load %arg8[%c0_122, %c0_123, %c0_124] : memref<4x8x32xf32, #tpu.memory_space<vmem>>, vector<1x8x32xf32>
      %127 = vector.shape_cast %126 : vector<1x8x32xf32> to vector<8x32xf32>
      %cst_125 = arith.constant dense<0.000000e+00> : vector<16x32xf32>
      %128 = tpu.matmul %125, %127, %cst_125 {dimension_numbers = #tpu.dot_dimension_numbers<[1], [0], [0], [1], [0, 0, 1, 1], [], []>} : vector<16x8xf32>, vector<8x32xf32>, vector<16x32xf32> -> vector<16x32xf32>
      %129 = arith.addf %123, %128 : vector<16x32xf32>
      %130 = vector.extract_strided_slice %119 {offsets = [1, 0, 0], sizes = [1, 16, 8], strides = [1, 1, 1]} : vector<4x16x8xf32> to vector<1x16x8xf32>
      %131 = vector.shape_cast %130 : vector<1x16x8xf32> to vector<16x8xf32>
      %c1_126 = arith.constant 1 : index
      %c0_127 = arith.constant 0 : index
      %c0_128 = arith.constant 0 : index
      %132 = vector.load %arg8[%c1_126, %c0_127, %c0_128] : memref<4x8x32xf32, #tpu.memory_space<vmem>>, vector<1x8x32xf32>
      %133 = vector.shape_cast %132 : vector<1x8x32xf32> to vector<8x32xf32>
      %cst_129 = arith.constant dense<0.000000e+00> : vector<16x32xf32>
      %134 = tpu.matmul %131, %133, %cst_129 {dimension_numbers = #tpu.dot_dimension_numbers<[1], [0], [0], [1], [0, 0, 1, 1], [], []>} : vector<16x8xf32>, vector<8x32xf32>, vector<16x32xf32> -> vector<16x32xf32>
      %135 = arith.addf %129, %134 : vector<16x32xf32>
      %136 = vector.extract_strided_slice %119 {offsets = [2, 0, 0], sizes = [1, 16, 8], strides = [1, 1, 1]} : vector<4x16x8xf32> to vector<1x16x8xf32>
      %137 = vector.shape_cast %136 : vector<1x16x8xf32> to vector<16x8xf32>
      %c2_130 = arith.constant 2 : index
      %c0_131 = arith.constant 0 : index
      %c0_132 = arith.constant 0 : index
      %138 = vector.load %arg8[%c2_130, %c0_131, %c0_132] : memref<4x8x32xf32, #tpu.memory_space<vmem>>, vector<1x8x32xf32>
      %139 = vector.shape_cast %138 : vector<1x8x32xf32> to vector<8x32xf32>
      %cst_133 = arith.constant dense<0.000000e+00> : vector<16x32xf32>
      %140 = tpu.matmul %137, %139, %cst_133 {dimension_numbers = #tpu.dot_dimension_numbers<[1], [0], [0], [1], [0, 0, 1, 1], [], []>} : vector<16x8xf32>, vector<8x32xf32>, vector<16x32xf32> -> vector<16x32xf32>
      %141 = arith.addf %135, %140 : vector<16x32xf32>
      %142 = vector.extract_strided_slice %119 {offsets = [3, 0, 0], sizes = [1, 16, 8], strides = [1, 1, 1]} : vector<4x16x8xf32> to vector<1x16x8xf32>
      %143 = vector.shape_cast %142 : vector<1x16x8xf32> to vector<16x8xf32>
      %c3_134 = arith.constant 3 : index
      %c0_135 = arith.constant 0 : index
      %c0_136 = arith.constant 0 : index
      %144 = vector.load %arg8[%c3_134, %c0_135, %c0_136] : memref<4x8x32xf32, #tpu.memory_space<vmem>>, vector<1x8x32xf32>
      %145 = vector.shape_cast %144 : vector<1x8x32xf32> to vector<8x32xf32>
      %cst_137 = arith.constant dense<0.000000e+00> : vector<16x32xf32>
      %146 = tpu.matmul %143, %145, %cst_137 {dimension_numbers = #tpu.dot_dimension_numbers<[1], [0], [0], [1], [0, 0, 1, 1], [], []>} : vector<16x8xf32>, vector<8x32xf32>, vector<16x32xf32> -> vector<16x32xf32>
      %147 = arith.addf %141, %146 : vector<16x32xf32>
      %cst_138 = arith.constant dense<0.000000e+00> : vector<16xf32>
      %148 = vector.multi_reduction <add>, %147, %cst_138 [1] : vector<16x32xf32> to vector<16xf32>
      %149 = vector.shape_cast %148 : vector<16xf32> to vector<16x1xf32>
      %cst_139 = arith.constant 3.200000e+01 : f32
      %150 = vector.broadcast %cst_139 : f32 to vector<16x1xf32>
      %151 = arith.divf %149, %150 : vector<16x1xf32>
      %152 = vector.broadcast %151 : vector<16x1xf32> to vector<16x32xf32>
      %153 = arith.subf %147, %152 : vector<16x32xf32>
      %154 = arith.mulf %153, %153 : vector<16x32xf32>
      %cst_140 = arith.constant dense<0.000000e+00> : vector<16xf32>
      %155 = vector.multi_reduction <add>, %154, %cst_140 [1] : vector<16x32xf32> to vector<16xf32>
      %156 = vector.shape_cast %155 : vector<16xf32> to vector<16x1xf32>
      %cst_141 = arith.constant 3.200000e+01 : f32
      %157 = vector.broadcast %cst_141 : f32 to vector<16x1xf32>
      %158 = arith.divf %156, %157 : vector<16x1xf32>
      %159 = vector.broadcast %151 : vector<16x1xf32> to vector<16x32xf32>
      %160 = arith.subf %147, %159 : vector<16x32xf32>
      %cst_142 = arith.constant 9.99999974E-6 : f32
      %161 = vector.broadcast %cst_142 : f32 to vector<16x1xf32>
      %162 = arith.addf %158, %161 : vector<16x1xf32>
      %163 = math.rsqrt %162 : vector<16x1xf32>
      %164 = vector.broadcast %163 : vector<16x1xf32> to vector<16x32xf32>
      %165 = arith.mulf %160, %164 : vector<16x32xf32>
      %c0_143 = arith.constant 0 : index
      %c0_144 = arith.constant 0 : index
      %166 = vector.load %arg13[%c0_143, %c0_144] : memref<1x32xf32, #tpu.memory_space<vmem>>, vector<1x32xf32>
      %167 = vector.broadcast %166 : vector<1x32xf32> to vector<16x32xf32>
      %168 = arith.mulf %165, %167 : vector<16x32xf32>
      %c0_145 = arith.constant 0 : index
      %c0_146 = arith.constant 0 : index
      %169 = vector.load %arg14[%c0_145, %c0_146] : memref<1x32xf32, #tpu.memory_space<vmem>>, vector<1x32xf32>
      %170 = vector.broadcast %169 : vector<1x32xf32> to vector<16x32xf32>
      %171 = arith.addf %168, %170 : vector<16x32xf32>
      %172 = tpu.transpose %171, [1, 0] : vector<16x32xf32> -> vector<32x16xf32>
      %c0_147 = arith.constant 0 : index
      %c0_148 = arith.constant 0 : index
      %c0_149 = arith.constant 0 : index
      %173 = vector.load %arg15[%c0_147, %c0_148, %c0_149] : memref<1x32x16xf32, #tpu.memory_space<vmem>>, vector<1x32x16xf32>
      %174 = vector.shape_cast %173 : vector<1x32x16xf32> to vector<32x16xf32>
      %175 = vector.shape_cast %172 : vector<32x16xf32> to vector<1x32x16xf32>
      tpu.vector_store %arg15[%c0_147, %c0_148, %c0_149], %175 {strides = array<i32>} : memref<1x32x16xf32, #tpu.memory_space<vmem>>, vector<1x32x16xf32>,
    } else {
    }
    return
  }
  func.func @transform_0(%arg0: i32, %arg1: i32, %arg2: i32) -> (i32, i32, i32) {
    %c0_i32 = arith.constant 0 : i32
    %c0_i32_0 = arith.constant 0 : i32
    return %arg0, %c0_i32, %arg1 : i32, i32, i32
  }
  func.func @transform_1(%arg0: i32, %arg1: i32, %arg2: i32) -> (i32, i32, i32) {
    %c0_i32 = arith.constant 0 : i32
    %c0_i32_0 = arith.constant 0 : i32
    return %arg0, %c0_i32, %arg2 : i32, i32, i32
  }
  func.func @transform_2(%arg0: i32, %arg1: i32, %arg2: i32) -> (i32, i32, i32) {
    %c0_i32 = arith.constant 0 : i32
    %c0_i32_0 = arith.constant 0 : i32
    %c0_i32_1 = arith.constant 0 : i32
    %c0_i32_2 = arith.constant 0 : i32
    return %c0_i32, %c0_i32_0, %c0_i32_1 : i32, i32, i32
  }
  func.func @transform_3(%arg0: i32, %arg1: i32, %arg2: i32) -> (i32, i32, i32) {
    %c0_i32 = arith.constant 0 : i32
    %c0_i32_0 = arith.constant 0 : i32
    %c0_i32_1 = arith.constant 0 : i32
    %c0_i32_2 = arith.constant 0 : i32
    return %c0_i32, %c0_i32_0, %c0_i32_1 : i32, i32, i32
  }
  func.func @transform_4(%arg0: i32, %arg1: i32, %arg2: i32) -> (i32, i32, i32) {
    %c0_i32 = arith.constant 0 : i32
    %c0_i32_0 = arith.constant 0 : i32
    %c0_i32_1 = arith.constant 0 : i32
    %c0_i32_2 = arith.constant 0 : i32
    return %c0_i32, %c0_i32_0, %c0_i32_1 : i32, i32, i32
  }
  func.func @transform_5(%arg0: i32, %arg1: i32, %arg2: i32) -> (i32, i32, i32) {
    %c0_i32 = arith.constant 0 : i32
    %c0_i32_0 = arith.constant 0 : i32
    %c0_i32_1 = arith.constant 0 : i32
    %c0_i32_2 = arith.constant 0 : i32
    return %c0_i32, %c0_i32_0, %c0_i32_1 : i32, i32, i32
  }
  func.func @transform_6(%arg0: i32, %arg1: i32, %arg2: i32) -> (i32, i32, i32) {
    %c0_i32 = arith.constant 0 : i32
    %c0_i32_0 = arith.constant 0 : i32
    %c0_i32_1 = arith.constant 0 : i32
    %c0_i32_2 = arith.constant 0 : i32
    return %c0_i32, %c0_i32_0, %c0_i32_1 : i32, i32, i32
  }
  func.func @transform_7(%arg0: i32, %arg1: i32, %arg2: i32) -> (i32, i32, i32) {
    %c0_i32 = arith.constant 0 : i32
    %c0_i32_0 = arith.constant 0 : i32
    %c0_i32_1 = arith.constant 0 : i32
    %c0_i32_2 = arith.constant 0 : i32
    return %c0_i32, %c0_i32_0, %c0_i32_1 : i32, i32, i32
  }
  func.func @transform_8(%arg0: i32, %arg1: i32, %arg2: i32) -> (i32, i32, i32) {
    %c0_i32 = arith.constant 0 : i32
    %c0_i32_0 = arith.constant 0 : i32
    %c0_i32_1 = arith.constant 0 : i32
    %c0_i32_2 = arith.constant 0 : i32
    return %c0_i32, %c0_i32_0, %c0_i32_1 : i32, i32, i32
  }
  func.func @transform_9(%arg0: i32, %arg1: i32, %arg2: i32) -> (i32, i32) {
    %c0_i32 = arith.constant 0 : i32
    %c0_i32_0 = arith.constant 0 : i32
    %c0_i32_1 = arith.constant 0 : i32
    return %c0_i32, %c0_i32_0 : i32, i32
  }
  func.func @transform_10(%arg0: i32, %arg1: i32, %arg2: i32) -> (i32, i32) {
    %c0_i32 = arith.constant 0 : i32
    %c0_i32_0 = arith.constant 0 : i32
    %c0_i32_1 = arith.constant 0 : i32
    return %c0_i32, %c0_i32_0 : i32, i32
  }
  func.func @transform_11(%arg0: i32, %arg1: i32, %arg2: i32) -> (i32, i32) {
    %c0_i32 = arith.constant 0 : i32
    %c0_i32_0 = arith.constant 0 : i32
    %c0_i32_1 = arith.constant 0 : i32
    return %c0_i32, %c0_i32_0 : i32, i32
  }
  func.func @transform_12(%arg0: i32, %arg1: i32, %arg2: i32) -> (i32, i32, i32) {
    %c0_i32 = arith.constant 0 : i32
    %c0_i32_0 = arith.constant 0 : i32
    return %arg0, %c0_i32, %arg1 : i32, i32, i32
  }
}

</mosaic_0001>

<bundles_post_ra>
// kernel: attn_block.1
= control target key start
LH: loop header
LB: loop body
LE: loop exit
PB: predicated region body
PF: predicated region fallthrough
CT: control target
= control target key end

     0   :  { %s4033_s21 = smov 0   ;;  %s4035_s22 = smov 0   ;;  %s4603_s0 = inlined_call_operand.vmem [shape: f32[2,32,16], index: 0, kind: input, shape index: {}, may-alias: {0,1}]   ;;  %s4604_s1 = inlined_call_operand.vmem [shape: f32[2,32,16], index: 1, kind: input, shape index: {}, may-alias: {0,1}]   ;;  %s4605_s2 = inlined_call_operand.vmem [shape: f32[4,32,8], index: 2, kind: input, shape index: {}]   ;;  %s4606_s3 = inlined_call_operand.vmem [shape: f32[4,32,8], index: 3, kind: input, shape index: {}]   ;;  %s4607_s4 = inlined_call_operand.vmem [shape: f32[4,32,8], index: 4, kind: input, shape index: {}]   ;;  %s4608_s5 = inlined_call_operand.vmem [shape: f32[4,8,32], index: 5, kind: input, shape index: {}]   ;;  %s4609_s6 = inlined_call_operand.vmem [shape: f32[4,1,8], index: 6, kind: input, shape index: {}]   ;;  %s4610_s7 = inlined_call_operand.vmem [shape: f32[4,1,8], index: 7, kind: input, shape index: {}]   ;;  %s4611_s8 = inlined_call_operand.vmem [shape: f32[4,1,8], index: 8, kind: input, shape index: {}]   ;;  %s4612_s9 = inlined_call_operand.vmem [shape: f32[1,32], index: 9, kind: input, shape index: {}]   ;;  %s4613_s10 = inlined_call_operand.vmem [shape: f32[1,32], index: 10, kind: input, shape index: {}]   ;;  %s4614_s11 = inlined_call_operand.vmem [shape: f32[1,32], index: 11, kind: input, shape index: {}]   ;;  %s4615_s12 = inlined_call_operand.vmem [shape: f32[2,32,16], index: 12, kind: output, shape index: {}]  }
   0x1   :  { %s4037_s23 = smov 0  }
   0x2 LB: > { %s41_s24 = sadd.s32 1, %s3959_s22  ;;  %p3261_p0 = scmp.ge.s32.totalorder %s3963_s23, 1  ;;  %s3963_s23 = sphi %s4037_s23, %s22_s23   ;;  %s3959_s22 = sphi %s4035_s22, %s4619_s22   ;;  %s3955_s21 = sphi %s4033_s21, %s4618_s21  }
   0x3   : > { %p43_p1 = scmp.ge.s32.totalorder %s41_s24, 2  ;;  %p403_p2 = scmp.lt.s32.totalorder %s3963_s23, 3 }
   0x5   : > { %s4621_s24 = smov (%p43_p1, %s41_s24), 0  ;;  %p404_p3 = pnand %p3261_p0, %p403_p2 }
   0x6   : > { %p459_p4 = scmp.lt.s32.totalorder (!%p404_p3), %s3955_s21, 1  ;;  %v526_v0 = vld [vmem:[%s4605_s2] sm:$0xff] (!%p404_p3)  ;;  %v527_v1 = vld [vmem:[%s4605_s2 + $0x8] sm:$0xff] (!%p404_p3)  ;;  %v528_v5 = vld [vmem:[%s4605_s2 + $0x10] sm:$0xff] (!%p404_p3)  ;;  %vm523_vm0 = vcmask (!%p404_p3), 261120   ;;  %vm618_vm1 = vcmask (!%p404_p3), 64512  }
   0x7   : > { %407 = sbr.rel (%p404_p3) target bundleno = 1886 (0x75e), region = 68  ;;  %v3279_v2 = vld [vmem:[%s4605_s2 + $0x40] sm:$0xff] (!%p404_p3)  ;;  %v3716_v3 = vpack.c.bf16 (!%p404_p3), %v527_v1, %v526_v0  ;;  %v3280_v4 = vld [vmem:[%s4605_s2 + $0x48] sm:$0xff] (!%p404_p3)  ;;  %v529_v6 = vld [vmem:[%s4605_s2 + $0x18] sm:$0xff] (!%p404_p3)  ;;  %vm894_vm3 = vcmask (!%p404_p3), 7168   ;;  %vm2065_vm4 = vcmask (!%p404_p3), 130048  }
   0x8   : > { %v3732_v7 = vpack.c.bf16 (!%p404_p3), %v3280_v4, %v3279_v2  ;;  %v3720_v8 = vpack.c.bf16 (!%p404_p3), %v529_v6, %v528_v5  ;;  %v3281_v9 = vld [vmem:[%s4605_s2 + $0x50] sm:$0xff] (!%p404_p3)  ;;  %v3282_v10 = vld [vmem:[%s4605_s2 + $0x58] sm:$0xff] (!%p404_p3)  ;;  %v3271_v16 = vld [vmem:[%s4605_s2 + $0x20] sm:$0xff] (!%p404_p3) }
   0x9   : > { %3717 = vmatprep.subr.bf16.mxu1 (!%p404_p3), %v3716_v3  ;;  %v3736_v11 = vpack.c.bf16 (!%p404_p3), %v3282_v10, %v3281_v9  ;;  %v3272_v17 = vld [vmem:[%s4605_s2 + $0x28] sm:$0xff] (!%p404_p3)  ;;  %v955_v18 = vld [vmem:[%s4606_s3] sm:$0xff] (!%p404_p3)  ;;  %v3273_v27 = vld [vmem:[%s4605_s2 + $0x30] sm:$0xff] (!%p404_p3) }
   0xa   : > { %3733 = vmatprep.subr.bf16.mxu0 (!%p404_p3), %v3732_v7  ;;  %3719 = vmatpush3.bf16.msra.mxu1 (!%p404_p3), %v3716_v3  ;;  %v956_v19 = vld [vmem:[%s4606_s3 + $0x8] sm:$0xff] (!%p404_p3)  ;;  %v3724_v20 = vpack.c.bf16 (!%p404_p3), %v3272_v17, %v3271_v16  ;;  %v3274_v28 = vld [vmem:[%s4605_s2 + $0x38] sm:$0xff] (!%p404_p3)  ;;  %v957_v29 = vld [vmem:[%s4606_s3 + $0x10] sm:$0xff] (!%p404_p3) }
   0xb   : > { %3735 = vmatpush3.bf16.msra.mxu0 (!%p404_p3), %v3732_v7  ;;  %3721 = vmatprep.subr.bf16.mxu1 (!%p404_p3), %v3720_v8  ;;  %v3748_v21 = vpack.c.bf16 (!%p404_p3), %v956_v19, %v955_v18  ;;  %v958_v30 = vld [vmem:[%s4606_s3 + $0x18] sm:$0xff] (!%p404_p3)  ;;  %v3728_v31 = vpack.c.bf16 (!%p404_p3), %v3274_v28, %v3273_v27  ;;  %v3287_v32 = vld [vmem:[%s4605_s2 + $0x60] sm:$0xff] (!%p404_p3)  ;;  %v3288_v36 = vld [vmem:[%s4605_s2 + $0x68] sm:$0xff] (!%p404_p3) }
   0xc   : > { %3737 = vmatprep.subr.bf16.mxu0 (!%p404_p3), %v3736_v11  ;;  %v3752_v35 = vpack.c.bf16 (!%p404_p3), %v958_v30, %v957_v29  ;;  %v3301_v37 = vld [vmem:[%s4606_s3 + $0x20] sm:$0xff] (!%p404_p3)  ;;  %v3302_v38 = vld [vmem:[%s4606_s3 + $0x28] sm:$0xff] (!%p404_p3)  ;;  %v3740_v39 = vpack.c.bf16 (!%p404_p3), %v3288_v36, %v3287_v32  ;;  %v3289_v41 = vld [vmem:[%s4605_s2 + $0x70] sm:$0xff] (!%p404_p3) }
   0xd   : > { %v3764_v40 = vpack.c.bf16 (!%p404_p3), %v3302_v38, %v3301_v37  ;;  %v3290_v42 = vld [vmem:[%s4605_s2 + $0x78] sm:$0xff] (!%p404_p3)  ;;  %v3303_v43 = vld [vmem:[%s4606_s3 + $0x30] sm:$0xff] (!%p404_p3)  ;;  %v959_v48 = vld [vmem:[%s4607_s4] sm:$0xff] (!%p404_p3) }
   0xe   : > { %s4623_s21 = smov (!%p459_p4, %s3955_s21), 1  ;;  %3723 = vmatpush3.bf16.msra.mxu1 %v3720_v8  ;;  %v3304_v44 = vld [vmem:[%s4606_s3 + $0x38] sm:$0xff]  ;;  %v3744_v46 = vpack.c.bf16 %v3290_v42, %v3289_v41  ;;  %v960_v49 = vld [vmem:[%s4607_s4 + $0x8] sm:$0xff]  ;;  %v3317_v50 = vld [vmem:[%s4606_s3 + $0x40] sm:$0xff] }
   0xf   : > { %s4075_s27 = sshll.u32 %s4623_s21, 5  ;;  %3739 = vmatpush3.bf16.msra.mxu0 %v3736_v11  ;;  %3725 = vmatprep.subr.bf16.mxu1 %v3724_v20  ;;  %v3768_v47 = vpack.c.bf16 %v3304_v44, %v3303_v43  ;;  %v3318_v51 = vld [vmem:[%s4606_s3 + $0x48] sm:$0xff]  ;;  %v3756_v52 = vpack.c.bf16 %v960_v49, %v959_v48  ;;  %v961_v54 = vld [vmem:[%s4607_s4 + $0x10] sm:$0xff]  ;;  %v962_v55 = vld [vmem:[%s4607_s4 + $0x18] sm:$0xff] }
  0x10   : > { %s466_s30 = scalar_lea.vmem %s4603_s0, %s4075_s27  ;;  %s474_s15 = scalar_lea.vmem %s4604_s1, %s4075_s27  ;;  %3749 = vmatprep.subr.bf16.mxu0 %v3748_v21  ;;  %v3780_v53 = vpack.c.bf16 %v3318_v51, %v3317_v50  ;;  %v3319_v56 = vld [vmem:[%s4606_s3 + $0x50] sm:$0xff]  ;;  %v3320_v57 = vld [vmem:[%s4606_s3 + $0x58] sm:$0xff]  ;;  %v3760_v58 = vpack.c.bf16 %v962_v55, %v961_v54  ;;  %v3305_v59 = vld [vmem:[%s4607_s4 + $0x20] sm:$0xff] }
  0x11   : > { %v487_v12 = vld [vmem:[%s466_s30] sm:$0xff]  ;;  %v488_v14 = vld [vmem:[%s466_s30 + $0x8] sm:$0xff]  ;;  %v489_v22 = vld [vmem:[%s466_s30 + $0x10] sm:$0xff]  ;;  %v3784_v61 = vpack.c.bf16 %v3320_v57, %v3319_v56  ;;  %s482_s28 = scalar_lea.vmem %s4615_s12, %s4075_s27 }
  0x12   : > { %v919_v13 = vld [vmem:[%s474_s15] sm:$0xff]  ;;  %491 = vxpose.xlu0.b32.start [1/4] (short) (narrow) %v487_v12, 16  ;;  %v920_v15 = vld [vmem:[%s474_s15 + $0x8] sm:$0xff]  ;;  %v921_v23 = vld [vmem:[%s474_s15 + $0x10] sm:$0xff] }
  0x13   : > { %923 = vxpose.xlu1.b32.start [1/4] (short) (narrow) %v919_v13, 16  ;;  %v490_v24 = vld [vmem:[%s466_s30 + $0x18] sm:$0xff]  ;;  %v3306_v60 = vld [vmem:[%s4607_s4 + $0x28] sm:$0xff]  ;;  %v3333_v62 = vld [vmem:[%s4606_s3 + $0x60] sm:$0xff] }
  0x14   : > { %v922_v25 = vld [vmem:[%s474_s15 + $0x18] sm:$0xff]  ;;  %v3334_v63 = vld [vmem:[%s4606_s3 + $0x68] sm:$0xff]  ;;  %v3772_v0 = vpack.c.bf16 %v3306_v60, %v3305_v59  ;;  %v3307_v2 = vld [vmem:[%s4607_s4 + $0x30] sm:$0xff] }
  0x15   : > { %v3796_v1 = vpack.c.bf16 %v3334_v63, %v3333_v62  ;;  %v3308_v3 = vld [vmem:[%s4607_s4 + $0x38] sm:$0xff]  ;;  %v3335_v4 = vld [vmem:[%s4606_s3 + $0x70] sm:$0xff]  ;;  %v3321_v7 = vld [vmem:[%s4607_s4 + $0x40] sm:$0xff] }
  0x16   : > { %492 = vxpose.xlu0.b32.cont [2/4] (short) (narrow) %v488_v14, 16  ;;  %v3336_v5 = vld [vmem:[%s4606_s3 + $0x78] sm:$0xff]  ;;  %v3776_v6 = vpack.c.bf16 %v3308_v3, %v3307_v2  ;;  %v3322_v8 = vld [vmem:[%s4607_s4 + $0x48] sm:$0xff]  ;;  %v3323_v11 = vld [vmem:[%s4607_s4 + $0x50] sm:$0xff] }
  0x17   : > { %924 = vxpose.xlu1.b32.cont [2/4] (short) (narrow) %v920_v15, 16  ;;  %v3800_v9 = vpack.c.bf16 %v3336_v5, %v3335_v4  ;;  %v3788_v10 = vpack.c.bf16 %v3322_v8, %v3321_v7  ;;  %v3324_v12 = vld [vmem:[%s4607_s4 + $0x58] sm:$0xff]  ;;  %v3337_v14 = vld [vmem:[%s4607_s4 + $0x60] sm:$0xff]  ;;  %v3338_v15 = vld [vmem:[%s4607_s4 + $0x68] sm:$0xff] }
  0x18   : > { %v3792_v13 = vpack.c.bf16 %v3324_v12, %v3323_v11  ;;  %v3804_v16 = vpack.c.bf16 %v3338_v15, %v3337_v14  ;;  %v3339_v17 = vld [vmem:[%s4607_s4 + $0x70] sm:$0xff]  ;;  %v3340_v18 = vld [vmem:[%s4607_s4 + $0x78] sm:$0xff]  ;;  %v3276_v30 = vld [vmem:[%s4609_s6 + $0x1] ss:$0 sm:$0xff] }
  0x19   : > { %v3808_v19 = vpack.c.bf16 %v3340_v18, %v3339_v17  ;;  %v3292_v41 = vld [vmem:[%s4609_s6 + $0x3] ss:$0 sm:$0xff]  ;;  %v3310_v42 = vld [vmem:[%s4610_s7 + $0x1] ss:$0 sm:$0xff]  ;;  %vm4281_vm2 = vmpackc.low %vm618_vm1, %vm618_vm1 }
  0x1a   : > { %493 = vxpose.xlu0.b32.cont [3/4] (short) (narrow) %v489_v22, 16  ;;  %v3298_v56 = vld [vmem:[%s4611_s8] ss:$0 sm:$0xff]  ;;  %v3326_v57 = vld [vmem:[%s4610_s7 + $0x2] ss:$0 sm:$0xff] }
  0x1b   : > { %925 = vxpose.xlu1.b32.cont [3/4] (short) (narrow) %v921_v23, 16  ;;  %v3314_v7 = vld [vmem:[%s4611_s8 + $0x1] ss:$0 sm:$0xff]  ;;  %v3342_v8 = vld [vmem:[%s4610_s7 + $0x3] ss:$0 sm:$0xff] }
  0x1e   : > { %494 = vxpose.xlu0.b32.end [4/4] (short) (narrow) %v490_v24, 16 }
  0x1f   : > { %926 = vxpose.xlu1.b32.end [4/4] (short) (narrow) %v922_v25, 16 }
  0x92   : > { %v507_v26 = vpop.trf.xlu0 }
  0x93   : > { %524 = vst.msk [vmem:[#allocation2] sm:$0xff] %vm523_vm0, %v507_v26  ;;  %3516 = vmatprep.mubr.msk.f32.mxu1 %vm523_vm0, %v507_v26  ;;  %3538 = vmatprep.mubr.msk.f32.mxu0 %vm523_vm0, %v507_v26  ;;  %v4115_v34 = vpop.trf.xlu1 }
  0x96   : > { %v508_v33 = vpop.trf.xlu0 }
  0x97   : > { %525 = vst.msk [vmem:[#allocation2 + $0x8] sm:$0xff] %vm523_vm0, %v508_v33  ;;  %3517 = vmatmul.mubr.msk.f32.vlgmr.msra.gmra.mrb[0].mxu1 %vm523_vm0, %v508_v33  ;;  %3539 = vmatmul.mubr.msk.f32.vlgmr.msra.gmra.mrb[0].mxu0 %vm523_vm0, %v508_v33  ;;  %v4144_v45 = vpop.trf.xlu1 }
  0x98   : > { %3727 = vmatpush3.bf16.msra.mxu1 %v3724_v20  ;;  %3751 = vmatpush3.bf16.msra.mxu0 %v3748_v21  ;;  %v3268_v20 = vld [vmem:[%s4609_s6] ss:$0 sm:$0xff]  ;;  %v3284_v21 = vld [vmem:[%s4609_s6 + $0x2] ss:$0 sm:$0xff] }
  0x99   : > { %3527 = vmatprep.mubr.msk.f32.mxu1 %vm523_vm0, %v507_v26  ;;  %3729 = vmatprep.subr.bf16.mxu1 %v3728_v31 }
  0x9a   : > { %3753 = vmatprep.subr.bf16.mxu0 %v3752_v35  ;;  %3560 = vmatprep.mubr.msk.f32.mxu0 %vm523_vm0, %v4115_v34 }
  0x9c   : > { %3731 = vmatpush3.bf16.msra.mxu1 %v3728_v31  ;;  %3755 = vmatpush3.bf16.msra.mxu0 %v3752_v35  ;;  %v3295_v31 = vld [vmem:[%s4610_s7] ss:$0 sm:$0xff] }
  0x9d   : > { %3741 = vmatprep.subr.bf16.mxu1 %v3740_v39  ;;  %3765 = vmatprep.subr.bf16.mxu0 %v3764_v40 }
  0x9f   : > { %3528 = vmatmul.mubr.msk.f32.vlgmr.msra.gmra.mrb[2].mxu1 %vm523_vm0, %v508_v33  ;;  %3561 = vmatmul.mubr.msk.f32.vlgmr.msra.gmra.mrb[2].mxu0 %vm523_vm0, %v4144_v45 }
  0xa0   : > { %3743 = vmatpush3.bf16.msra.mxu1 %v3740_v39  ;;  %3549 = vmatprep.mubr.msk.f32.mxu1 %vm523_vm0, %v507_v26 }
  0xa1   : > { %3767 = vmatpush3.bf16.msra.mxu0 %v3764_v40  ;;  %3582 = vmatprep.mubr.msk.f32.mxu0 %vm523_vm0, %v4115_v34 }
  0xa2   : > { %3745 = vmatprep.subr.bf16.mxu1 %v3744_v46  ;;  %3769 = vmatprep.subr.bf16.mxu0 %v3768_v47 }
  0xa4   : > { %3747 = vmatpush3.bf16.msra.mxu1 %v3744_v46 }
  0xa5   : > { %3771 = vmatpush3.bf16.msra.mxu0 %v3768_v47  ;;  %3757 = vmatprep.subr.bf16.mxu1 %v3756_v52 }
  0xa6   : > { %3781 = vmatprep.subr.bf16.mxu0 %v3780_v53 }
  0xa7   : > { %3550 = vmatmul.mubr.msk.f32.vlgmr.msra.gmra.mrb[4].mxu1 %vm523_vm0, %v508_v33 }
  0xa8   : > { %3583 = vmatmul.mubr.msk.f32.vlgmr.msra.gmra.mrb[4].mxu0 %vm523_vm0, %v4144_v45  ;;  %3759 = vmatpush3.bf16.msra.mxu1 %v3756_v52 }
  0xa9   : > { %3571 = vmatprep.mubr.msk.f32.mxu1 %vm523_vm0, %v4115_v34  ;;  %3783 = vmatpush3.bf16.msra.mxu0 %v3780_v53 }
  0xaa   : > { %3604 = vmatprep.mubr.msk.f32.mxu0 %vm523_vm0, %v4115_v34  ;;  %3761 = vmatprep.subr.bf16.mxu1 %v3760_v58 }
  0xab   : > { %3785 = vmatprep.subr.bf16.mxu0 %v3784_v61 }
  0xac   : > { %3763 = vmatpush3.bf16.msra.mxu1 %v3760_v58 }
  0xad   : > { %3787 = vmatpush3.bf16.msra.mxu0 %v3784_v61  ;;  %3773 = vmatprep.subr.bf16.mxu1 %v3772_v0 }
  0xae   : > { %3797 = vmatprep.subr.bf16.mxu0 %v3796_v1 }
  0xaf   : > { %3572 = vmatmul.mubr.msk.f32.vlgmr.msra.gmra.mrb[6].mxu1 %vm523_vm0, %v4144_v45 }
  0xb0   : > { %3605 = vmatmul.mubr.msk.f32.vlgmr.msra.gmra.mrb[6].mxu0 %vm523_vm0, %v4144_v45  ;;  %3775 = vmatpush3.bf16.msra.mxu1 %v3772_v0 }
  0xb1   : > { %3593 = vmatprep.mubr.msk.f32.mxu1 %vm523_vm0, %v4115_v34  ;;  %3799 = vmatpush3.bf16.msra.mxu0 %v3796_v1 }
  0xb2   : > { %3626 = vmatprep.mubr.msk.f32.mxu0 %vm523_vm0, %v4115_v34  ;;  %3777 = vmatprep.subr.bf16.mxu1 %v3776_v6 }
  0xb3   : > { %3801 = vmatprep.subr.bf16.mxu0 %v3800_v9 }
  0xb4   : > { %3779 = vmatpush3.bf16.msra.mxu1 %v3776_v6 }
  0xb5   : > { %3803 = vmatpush3.bf16.msra.mxu0 %v3800_v9  ;;  %3789 = vmatprep.subr.bf16.mxu1 %v3788_v10 }
  0xb7   : > { %3594 = vmatmul.mubr.msk.f32.vlgmr.msra.gmra.mrb[8].mxu1 %vm523_vm0, %v4144_v45 }
  0xb8   : > { %3627 = vmatmul.mubr.msk.f32.vlgmr.msra.gmra.mrb[8].mxu0 %vm523_vm0, %v4144_v45  ;;  %3791 = vmatpush3.bf16.msra.mxu1 %v3788_v10 }
  0xb9   : > { %3615 = vmatprep.mubr.msk.f32.mxu1 %vm523_vm0, %v4115_v34  ;;  %3793 = vmatprep.subr.bf16.mxu1 %v3792_v13 }
  0xbc   : > { %3795 = vmatpush3.bf16.msra.mxu1 %v3792_v13 }
  0xbd   : > { %3805 = vmatprep.subr.bf16.mxu1 %v3804_v16 }
  0xbf   : > { %3616 = vmatmul.mubr.msk.f32.vlgmr.msra.gmra.mrb[10].mxu1 %vm523_vm0, %v4144_v45 }
  0xc0   : > { %3807 = vmatpush3.bf16.msra.mxu1 %v3804_v16  ;;  %3637 = vmatprep.mubr.msk.f32.mxu1 %vm523_vm0, %v4115_v34 }
  0xc1   : > { %3809 = vmatprep.subr.bf16.mxu1 %v3808_v19 }
  0xc4   : > { %3811 = vmatpush3.bf16.msra.mxu1 %v3808_v19 }
  0xc7   : > { %3638 = vmatmul.mubr.msk.f32.vlgmr.msra.gmra.mrb[12].mxu1 %vm523_vm0, %v4144_v45 }
 0x16a   : > { %v3518_v22 = vpop.f32.mrb[0].mxu1  ;;  %v3540_v23 = vpop.f32.mrb[0].mxu0 }
 0x16b   : > { %v615_v24 = vadd.f32 %v3518_v22, %v3268_v20  ;;  %v797_v25 = vadd.f32 %v3540_v23, %v3284_v21  ;;  %v609_v26 = vpop.f32.mrb[1].mxu1  ;;  %v791_v27 = vpop.f32.mrb[1].mxu0  ;;  %v3330_v23 = vld [vmem:[%s4611_s8 + $0x2] ss:$0 sm:$0xff] }
 0x16c   : > { %v610_v28 = vadd.f32 %v3268_v20, %v609_v26  ;;  %v792_v29 = vadd.f32 %v3284_v21, %v791_v27 }
 0x16d   : > { %620 = vst.msk [vmem:[#allocation3 + $0x8] sm:$0xff] %vm618_vm1, %v615_v24  ;;  %802 = vst.msk [vmem:[#allocation3 + $0x28] sm:$0xff] %vm618_vm1, %v797_v25 }
 0x16e   : > { %619 = vst.msk [vmem:[#allocation3] sm:$0xff] %vm618_vm1, %v610_v28  ;;  %801 = vst.msk [vmem:[#allocation3 + $0x20] sm:$0xff] %vm618_vm1, %v792_v29 }
 0x172   : > { %v3529_v32 = vpop.f32.mrb[2].mxu1  ;;  %v3562_v33 = vpop.f32.mrb[2].mxu0 }
 0x173   : > { %v706_v34 = vadd.f32 %v3529_v32, %v3276_v30  ;;  %v1049_v35 = vadd.f32 %v3562_v33, %v3295_v31  ;;  %v700_v36 = vpop.f32.mrb[3].mxu1  ;;  %v1043_v37 = vpop.f32.mrb[3].mxu0 }
 0x174   : > { %v701_v38 = vadd.f32 %v3276_v30, %v700_v36  ;;  %v1044_v39 = vadd.f32 %v3295_v31, %v1043_v37  ;;  %v1686_v4 = vld [vmem:[#allocation3 + $0x8] sm:$0xff]  ;;  %v3346_v36 = vld [vmem:[%s4611_s8 + $0x3] ss:$0 sm:$0xff] }
 0x175   : > { %711 = vst.msk [vmem:[#allocation3 + $0x18] sm:$0xff] %vm618_vm1, %v706_v34  ;;  %1054 = vst.msk [vmem:[#allocation4 + $0x8] sm:$0xff] %vm618_vm1, %v1049_v35  ;;  %v1685_v40 = vld [vmem:[#allocation3] sm:$0xff]  ;;  %v1690_v35 = vld [vmem:[#allocation3 + $0x28] sm:$0xff] }
 0x176   : > { %710 = vst.msk [vmem:[#allocation3 + $0x10] sm:$0xff] %vm618_vm1, %v701_v38  ;;  %1053 = vst.msk [vmem:[#allocation4] sm:$0xff] %vm618_vm1, %v1044_v39  ;;  %3644 = vmatprep.mubr.msk.f32.mxu0 %vm618_vm1, %v1685_v40  ;;  %v1689_v6 = vld [vmem:[#allocation3 + $0x20] sm:$0xff] }
 0x17a   : > { %v3551_v43 = vpop.f32.mrb[4].mxu1 }
 0x17b   : > { %v888_v44 = vadd.f32 %v3551_v43, %v3292_v41  ;;  %v3584_v45 = vpop.f32.mrb[4].mxu0  ;;  %v882_v46 = vpop.f32.mrb[5].mxu1 }
 0x17c   : > { %v1229_v47 = vadd.f32 %v3584_v45, %v3310_v42  ;;  %v883_v48 = vadd.f32 %v3292_v41, %v882_v46  ;;  %v1223_v49 = vpop.f32.mrb[5].mxu0  ;;  %v1694_v50 = vld [vmem:[#allocation4 + $0x8] sm:$0xff]  ;;  %v1688_v22 = vld [vmem:[#allocation3 + $0x18] sm:$0xff] }
 0x17d   : > { %893 = vst.msk [vmem:[#allocation3 + $0x38] sm:$0xff] %vm618_vm1, %v888_v44  ;;  %v1224_v51 = vadd.f32 %v3310_v42, %v1223_v49  ;;  %v1687_v52 = vld [vmem:[#allocation3 + $0x10] sm:$0xff]  ;;  %v1693_v53 = vld [vmem:[#allocation4] sm:$0xff]  ;;  %v3965_v49 = vmov -inf  }
 0x17e   : > { %1234 = vst.msk [vmem:[#allocation4 + $0x18] sm:$0xff] %vm618_vm1, %v1229_v47  ;;  %892 = vst.msk [vmem:[#allocation3 + $0x30] sm:$0xff] %vm618_vm1, %v883_v48  ;;  %3651 = vmatprep.mubr.msk.f32.mxu1 %vm618_vm1, %v1687_v52  ;;  %v3812_v55 = vpack.c.bf16 %v1694_v50, %v1693_v53 }
 0x17f   : > { %1233 = vst.msk [vmem:[#allocation4 + $0x10] sm:$0xff] %vm618_vm1, %v1224_v51 }
 0x180   : > { %3814 = vmatprep.subr.msk.bf16.mxu0 %vm4281_vm2, %v3812_v55  ;;  %896 = vst.msk [vmem:[#allocation6 + $0x8] sm:$0xff] %vm894_vm3, %v3965_v49  ;;  %895 = vst.msk [vmem:[#allocation6] sm:$0xff] %vm894_vm3, %v3965_v49 }
 0x181   : > { %3817 = vmatpush3.bf16.xpose.msk.msra.mxu0 %vm4281_vm2, %v3812_v55  ;;  %897 = vst.msk [vmem:[#allocation6 + $0x10] sm:$0xff] %vm894_vm3, %v3965_v49  ;;  %898 = vst.msk [vmem:[#allocation6 + $0x18] sm:$0xff] %vm894_vm3, %v3965_v49 }
 0x182   : > { %v3573_v58 = vpop.f32.mrb[6].mxu1  ;;  %899 = vst.msk [vmem:[#allocation6 + $0x20] sm:$0xff] %vm894_vm3, %v3965_v49  ;;  %900 = vst.msk [vmem:[#allocation6 + $0x28] sm:$0xff] %vm894_vm3, %v3965_v49 }
 0x183   : > { %v1134_v59 = vadd.f32 %v3573_v58, %v3298_v56  ;;  %v3606_v60 = vpop.f32.mrb[6].mxu0  ;;  %v1128_v61 = vpop.f32.mrb[7].mxu1  ;;  %901 = vst.msk [vmem:[#allocation6 + $0x30] sm:$0xff] %vm894_vm3, %v3965_v49  ;;  %902 = vst.msk [vmem:[#allocation6 + $0x38] sm:$0xff] %vm894_vm3, %v3965_v49 }
 0x184   : > { %v1411_v62 = vadd.f32 %v3606_v60, %v3326_v57  ;;  %v1129_v63 = vadd.f32 %v3298_v56, %v1128_v61  ;;  %v1405_v0 = vpop.f32.mrb[7].mxu0  ;;  %v1692_v45 = vld [vmem:[#allocation3 + $0x38] sm:$0xff] }
 0x185   : > { %1138 = vst.msk [vmem:[#allocation5 + $0x8] sm:$0xff] %vm618_vm1, %v1134_v59  ;;  %v1406_v1 = vadd.f32 %v3326_v57, %v1405_v0  ;;  %v1696_v2 = vld [vmem:[#allocation4 + $0x18] sm:$0xff]  ;;  %v1691_v24 = vld [vmem:[#allocation3 + $0x30] sm:$0xff] }
 0x186   : > { %1416 = vst.msk [vmem:[#allocation4 + $0x28] sm:$0xff] %vm618_vm1, %v1411_v62  ;;  %1137 = vst.msk [vmem:[#allocation5] sm:$0xff] %vm618_vm1, %v1129_v63  ;;  %v1695_v3 = vld [vmem:[#allocation4 + $0x10] sm:$0xff]  ;;  %v3966_v62 = vmov 0  }
 0x187   : > { %1415 = vst.msk [vmem:[#allocation4 + $0x20] sm:$0xff] %vm618_vm1, %v1406_v1  ;;  %v3818_v5 = vpack.c.bf16 %v1696_v2, %v1695_v3  ;;  %3888 = vset.pattern.permute.xlu1 %v3966_v62  ;;  %3887 = vset.pattern.permute.xlu0 %v3966_v62  ;;  %v3967_v3 = vmov 0.0  }
 0x188   : > { %3645 = vmatmul.mubr.msk.f32.vlgmr.msra.gmra.mrb[10].mxu0 %vm618_vm1, %v1686_v4  ;;  %904 = vst.msk [vmem:[#allocation7 + $0x8] sm:$0xff] %vm894_vm3, %v3967_v3  ;;  %903 = vst.msk [vmem:[#allocation7] sm:$0xff] %vm894_vm3, %v3967_v3  ;;  %v4403_v4 = vld [vmem:[#allocation6 + $0x8] sm:$0xff] }
 0x189   : > { %3820 = vmatprep.subr.msk.bf16.mxu1 %vm4281_vm2, %v3818_v5  ;;  %3658 = vmatprep.mubr.msk.f32.mxu0 %vm618_vm1, %v1689_v6  ;;  %905 = vst.msk [vmem:[#allocation7 + $0x10] sm:$0xff] %vm894_vm3, %v3967_v3  ;;  %906 = vst.msk [vmem:[#allocation7 + $0x18] sm:$0xff] %vm894_vm3, %v3967_v3 }
 0x18a   : > { %3823 = vmatpush3.bf16.xpose.msk.msra.mxu1 %vm4281_vm2, %v3818_v5  ;;  %v3595_v9 = vpop.f32.mrb[8].mxu1  ;;  %907 = vst.msk [vmem:[#allocation7 + $0x20] sm:$0xff] %vm894_vm3, %v3967_v3  ;;  %908 = vst.msk [vmem:[#allocation7 + $0x28] sm:$0xff] %vm894_vm3, %v3967_v3  ;;  %v4405_v5 = vld [vmem:[#allocation6] sm:$0xff] }
 0x18b   : > { %v1315_v10 = vadd.f32 %v3595_v9, %v3314_v7  ;;  %v3628_v11 = vpop.f32.mrb[8].mxu0  ;;  %v1309_v12 = vpop.f32.mrb[9].mxu1  ;;  %909 = vst.msk [vmem:[#allocation7 + $0x30] sm:$0xff] %vm894_vm3, %v3967_v3  ;;  %910 = vst.msk [vmem:[#allocation7 + $0x38] sm:$0xff] %vm894_vm3, %v3967_v3 }
 0x18c   : > { %v1593_v13 = vadd.f32 %v3628_v11, %v3342_v8  ;;  %v1310_v14 = vadd.f32 %v3314_v7, %v1309_v12  ;;  %v1587_v15 = vpop.f32.mrb[9].mxu0  ;;  %v1702_v20 = vld [vmem:[#allocation5 + $0x8] sm:$0xff]  ;;  %911 = vst.msk [vmem:[#allocation8] sm:$0xff] %vm618_vm1, %v3967_v3  ;;  %912 = vst.msk [vmem:[#allocation8 + $0x8] sm:$0xff] %vm618_vm1, %v3967_v3  ;;  %v4423_v12 = vld [vmem:[#allocation6 + $0x10] sm:$0xff] }
 0x18d   : > { %1320 = vst.msk [vmem:[#allocation5 + $0x18] sm:$0xff] %vm618_vm1, %v1315_v10  ;;  %v1588_v16 = vadd.f32 %v3342_v8, %v1587_v15  ;;  %v1698_v17 = vld [vmem:[#allocation4 + $0x28] sm:$0xff]  ;;  %v1701_v19 = vld [vmem:[#allocation5] sm:$0xff]  ;;  %913 = vst.msk [vmem:[#allocation8 + $0x10] sm:$0xff] %vm618_vm1, %v3967_v3 }
 0x18e   : > { %1598 = vst.msk [vmem:[#allocation4 + $0x38] sm:$0xff] %vm618_vm1, %v1593_v13  ;;  %1319 = vst.msk [vmem:[#allocation5 + $0x10] sm:$0xff] %vm618_vm1, %v1310_v14  ;;  %v1697_v18 = vld [vmem:[#allocation4 + $0x20] sm:$0xff]  ;;  %v3836_v25 = vpack.c.bf16 %v1702_v20, %v1701_v19  ;;  %v4428_v15 = vld [vmem:[#allocation6 + $0x18] sm:$0xff] }
 0x18f   : > { %1597 = vst.msk [vmem:[#allocation4 + $0x30] sm:$0xff] %vm618_vm1, %v1588_v16  ;;  %v3824_v21 = vpack.c.bf16 %v1698_v17, %v1697_v18  ;;  %914 = vst.msk [vmem:[#allocation8 + $0x18] sm:$0xff] %vm618_vm1, %v3967_v3  ;;  %v4438_v19 = vld [vmem:[#allocation6 + $0x28] sm:$0xff]  ;;  %v4440_v20 = vld [vmem:[#allocation6 + $0x20] sm:$0xff] }
 0x190   : > { %915 = vst.msk [vmem:[#allocation8 + $0x20] sm:$0xff] %vm618_vm1, %v3967_v3  ;;  %916 = vst.msk [vmem:[#allocation8 + $0x28] sm:$0xff] %vm618_vm1, %v3967_v3 }
 0x191   : > { %3652 = vmatmul.mubr.msk.f32.vlgmr.msra.gmra.mrb[14].mxu1 %vm618_vm1, %v1688_v22  ;;  %3826 = vmatprep.subr.msk.bf16.mxu0 %vm4281_vm2, %v3824_v21  ;;  %917 = vst.msk [vmem:[#allocation8 + $0x30] sm:$0xff] %vm618_vm1, %v3967_v3  ;;  %918 = vst.msk [vmem:[#allocation8 + $0x38] sm:$0xff] %vm618_vm1, %v3967_v3 }
 0x192   : > { %3829 = vmatpush3.bf16.xpose.msk.msra.mxu0 %vm4281_vm2, %v3824_v21  ;;  %3665 = vmatprep.mubr.msk.f32.mxu1 %vm618_vm1, %v1691_v24  ;;  %v3617_v26 = vpop.f32.mrb[10].mxu1 }
 0x193   : > { %v1497_v27 = vadd.f32 %v3617_v26, %v3330_v23  ;;  %3837 = vmatprep.subr.bf16.mxu0 %v3836_v25  ;;  %v1491_v28 = vpop.f32.mrb[11].mxu1 }
 0x194   : > { %v1492_v29 = vadd.f32 %v3330_v23, %v1491_v28  ;;  %v1704_v33 = vld [vmem:[#allocation5 + $0x18] sm:$0xff] }
 0x195   : > { %1502 = vst.msk [vmem:[#allocation5 + $0x28] sm:$0xff] %vm618_vm1, %v1497_v27  ;;  %v1700_v30 = vld [vmem:[#allocation4 + $0x38] sm:$0xff]  ;;  %v1703_v32 = vld [vmem:[#allocation5 + $0x10] sm:$0xff] }
 0x196   : > { %1501 = vst.msk [vmem:[#allocation5 + $0x20] sm:$0xff] %vm618_vm1, %v1492_v29  ;;  %v1699_v31 = vld [vmem:[#allocation4 + $0x30] sm:$0xff]  ;;  %v3840_v37 = vpack.c.bf16 %v1704_v33, %v1703_v32  ;;  %v4462_v28 = vld [vmem:[#allocation6 + $0x38] sm:$0xff] }
 0x197   : > { %v3830_v34 = vpack.c.bf16 %v1700_v30, %v1699_v31  ;;  %v4464_v29 = vld [vmem:[#allocation6 + $0x30] sm:$0xff] }
 0x199   : > { %3659 = vmatmul.mubr.msk.f32.vlgmr.msra.gmra.mrb[12].mxu0 %vm618_vm1, %v1690_v35  ;;  %3832 = vmatprep.subr.msk.bf16.mxu1 %vm4281_vm2, %v3830_v34 }
 0x19a   : > { %3835 = vmatpush3.bf16.xpose.msk.msra.mxu1 %vm4281_vm2, %v3830_v34  ;;  %3839 = vmatpush3.bf16.msra.mxu0 %v3836_v25  ;;  %v3639_v38 = vpop.f32.mrb[12].mxu1 }
 0x19b   : > { %v1679_v39 = vadd.f32 %v3639_v38, %v3346_v36  ;;  %3841 = vmatprep.subr.bf16.mxu1 %v3840_v37  ;;  %v1673_v40 = vpop.f32.mrb[13].mxu1 }
 0x19c   : > { %v1674_v41 = vadd.f32 %v3346_v36, %v1673_v40  ;;  %v1706_v42 = vld [vmem:[#allocation5 + $0x28] sm:$0xff] }
 0x19d   : > { %1684 = vst.msk [vmem:[#allocation5 + $0x38] sm:$0xff] %vm618_vm1, %v1679_v39  ;;  %v1705_v43 = vld [vmem:[#allocation5 + $0x20] sm:$0xff] }
 0x19e   : > { %1683 = vst.msk [vmem:[#allocation5 + $0x30] sm:$0xff] %vm618_vm1, %v1674_v41  ;;  %v4340_v44 = vpack.c.bf16 %v1706_v42, %v1705_v43 }
 0x1a0   : > { %3845 = vmatprep.subr.bf16.mxu0 %v4340_v44 }
 0x1a1   : > { %3666 = vmatmul.mubr.msk.f32.vlgmr.msra.gmra.mrb[16].mxu1 %vm618_vm1, %v1692_v45 }
 0x1a2   : > { %3843 = vmatpush3.bf16.msra.mxu1 %v3840_v37 }
 0x1a4   : > { %v1708_v46 = vld [vmem:[#allocation5 + $0x38] sm:$0xff] }
 0x1a5   : > { %v1707_v47 = vld [vmem:[#allocation5 + $0x30] sm:$0xff] }
 0x1a6   : > { %v4344_v48 = vpack.c.bf16 %v1708_v46, %v1707_v47 }
 0x1a8   : > { %3849 = vmatprep.subr.bf16.mxu1 %v4344_v48 }
 0x25b   : > { %v4355_v50 = vpop.f32.mrb[10].mxu0 }
 0x25c   : > { %v4357_v51 = vpop.f32.mrb[11].mxu0  ;;  %v2069_v52 = vsel %vm2065_vm4, %v4355_v50, -inf }
 0x25d   : > { %2070 = vmax.xlane.f32.xlu1 %v2069_v52  ;;  %v2066_v53 = vsel %vm2065_vm4, %v4357_v51, -inf }
 0x25e   : > { %2067 = vmax.xlane.f32.xlu0 %v2066_v53 }
 0x264   : > { %v4363_v54 = vpop.f32.mrb[14].mxu1 }
 0x265   : > { %v4365_v55 = vpop.f32.mrb[15].mxu1  ;;  %v2075_v57 = vsel %vm2065_vm4, %v4363_v54, -inf }
 0x266   : > { %v2072_v56 = vsel %vm2065_vm4, %v4365_v55, -inf }
 0x267   : > { %2073 = vmax.xlane.f32.xlu1 %v2072_v56 }
 0x26b   : > { %2076 = vmax.xlane.f32.xlu1 %v2075_v57 }
 0x26c   : > { %v4371_v58 = vpop.f32.mrb[12].mxu0 }
 0x26d   : > { %v4373_v59 = vpop.f32.mrb[13].mxu0  ;;  %v2081_v60 = vsel %vm2065_vm4, %v4371_v58, -inf }
 0x26e   : > { %v2078_v61 = vsel %vm2065_vm4, %v4373_v59, -inf }
 0x26f   : > { %2082 = vmax.xlane.f32.xlu1 %v2081_v60  ;;  %2079 = vmax.xlane.f32.xlu0 %v2078_v61 }
 0x274   : > { %v4379_v63 = vpop.f32.mrb[16].mxu1 }
 0x275   : > { %v4381_v0 = vpop.f32.mrb[17].mxu1  ;;  %v2087_v1 = vsel %vm2065_vm4, %v4379_v63, -inf }
 0x276   : > { %2088 = vmax.xlane.f32.xlu1 %v2087_v1  ;;  %v2084_v2 = vsel %vm2065_vm4, %v4381_v0, -inf }
 0x277   : > { %2085 = vmax.xlane.f32.xlu0 %v2084_v2 }
 0x2ea   : > { %v2071_v6 = vpop.xlane.xlu1 %2070 }
 0x2eb   : > { %v4408_v7 = vmax.f32 %v4403_v4, %v2071_v6  ;;  %v2068_v8 = vpop.xlane.xlu0 %2067 }
 0x2ec   : > { %v4411_v9 = vmax.f32 %v4405_v5, %v2068_v8 }
 0x2ed   : > { %v2099_v10 = vsub.f32 %v4403_v4, %v4408_v7  ;;  %2640 = vst.msk [vmem:[#allocation6 + $0x8] sm:$0xff] %vm894_vm3, %v4408_v7  ;;  %2129 = vperm.xlu1 %3888, %v4408_v7  }
 0x2ee   : > { %v2098_v11 = vsub.f32 %v4405_v5, %v4411_v9  ;;  %2639 = vst.msk [vmem:[#allocation6] sm:$0xff] %vm894_vm3, %v4411_v9  ;;  %2124 = vperm.xlu0 %3887, %v4411_v9  }
 0x2ef   : > { %v2108_v5 = vmul.f32 1.442695, %v2099_v10 }
 0x2f4   : > { %v2074_v13 = vpop.xlane.xlu1 %2073 }
 0x2f5   : > { %v4426_v14 = vmax.f32 %v4423_v12, %v2074_v13 }
 0x2f7   : > { %v2100_v16 = vsub.f32 %v4423_v12, %v4426_v14  ;;  %2641 = vst.msk [vmem:[#allocation6 + $0x10] sm:$0xff] %vm894_vm3, %v4426_v14  ;;  %2134 = vperm.xlu1 %3888, %v4426_v14   ;;  %v2187_v12 = vld [vmem:[#allocation7 + $0x8] sm:$0xff]  ;;  %v2186_v14 = vld [vmem:[#allocation7] sm:$0xff] }
 0x2f8   : > { %v2077_v17 = vpop.xlane.xlu1 %2076 }
 0x2f9   : > { %v4436_v18 = vmax.f32 %v4428_v15, %v2077_v17 }
 0x2fb   : > { %v2101_v21 = vsub.f32 %v4428_v15, %v4436_v18  ;;  %2642 = vst.msk [vmem:[#allocation6 + $0x18] sm:$0xff] %vm894_vm3, %v4436_v18  ;;  %2139 = vperm.xlu1 %3888, %v4436_v18  }
 0x2fc   : > { %v2083_v22 = vpop.xlane.xlu1 %2082  ;;  %v2080_v23 = vpop.xlane.xlu0 %2079 }
 0x2fd   : > { %v4448_v24 = vmax.f32 %v4438_v19, %v2083_v22  ;;  %v4451_v25 = vmax.f32 %v4440_v20, %v2080_v23 }
 0x2ff   : > { %v2103_v26 = vsub.f32 %v4438_v19, %v4448_v24  ;;  %2644 = vst.msk [vmem:[#allocation6 + $0x28] sm:$0xff] %vm894_vm3, %v4448_v24  ;;  %v2102_v27 = vsub.f32 %v4440_v20, %v4451_v25  ;;  %2643 = vst.msk [vmem:[#allocation6 + $0x20] sm:$0xff] %vm894_vm3, %v4451_v25  ;;  %2144 = vperm.xlu1 %3888, %v4451_v25   ;;  %v2188_v20 = vld [vmem:[#allocation7 + $0x10] sm:$0xff] }
 0x301   : > { %v2114_v15 = vmul.f32 1.442695, %v2102_v27 }
 0x303   : > { %v2089_v30 = vpop.xlane.xlu1 %2088  ;;  %2149 = vperm.xlu1 %3888, %v4448_v24  }
 0x304   : > { %v4468_v31 = vmax.f32 %v4462_v28, %v2089_v30  ;;  %v2086_v32 = vpop.xlane.xlu0 %2085 }
 0x305   : > { %v4471_v33 = vmax.f32 %v4464_v29, %v2086_v32  ;;  %v2106_v32 = vmul.f32 1.442695, %v2098_v11 }
 0x306   : > { %v2105_v34 = vsub.f32 %v4462_v28, %v4468_v31  ;;  %2646 = vst.msk [vmem:[#allocation6 + $0x38] sm:$0xff] %vm894_vm3, %v4468_v31 }
 0x307   : > { %v2104_v35 = vsub.f32 %v4464_v29, %v4471_v33  ;;  %2645 = vst.msk [vmem:[#allocation6 + $0x30] sm:$0xff] %vm894_vm3, %v4471_v33  ;;  %2154 = vperm.xlu1 %3888, %v4471_v33   ;;  %v2190_v33 = vld [vmem:[#allocation7 + $0x20] sm:$0xff] }
 0x308   : > { %v2120_v19 = vmul.f32 1.442695, %v2105_v34 }
 0x30b   : > { %2159 = vperm.xlu1 %3888, %v4468_v31  }
 0x36c   : > { %v2130_v36 = vpop.permute.xlu1 %2129 }
 0x36d   : > { %v2163_v37 = vsub.f32 %v4355_v50, %v2130_v36  ;;  %v2125_v38 = vpop.permute.xlu0 %2124 }
 0x36e   : > { %v2162_v39 = vsub.f32 %v4357_v51, %v2125_v38  ;;  %v2112_v38 = vmul.f32 1.442695, %v2101_v21 }
 0x36f   : > { %v2172_v40 = vmul.f32 1.442695, %v2163_v37  ;;  %v2110_v37 = vmul.f32 1.442695, %v2100_v16 }
 0x370   : > { %v2170_v41 = vmul.f32 1.442695, %v2162_v39 }
 0x371   : > { %3889 = vpow2.f32 %v2172_v40 }
 0x372   : > { %3891 = vpow2.f32 %v2170_v41  ;;  %v2116_v41 = vmul.f32 1.442695, %v2103_v26 }
 0x376   : > { %v2135_v42 = vpop.permute.xlu1 %2134 }
 0x377   : > { %v2164_v43 = vsub.f32 %v4365_v55, %v2135_v42  ;;  %v2118_v42 = vmul.f32 1.442695, %v2104_v35 }
 0x379   : > { %v2174_v45 = vmul.f32 1.442695, %v2164_v43  ;;  %v2189_v43 = vld [vmem:[#allocation7 + $0x18] sm:$0xff] }
 0x37a   : > { %v2140_v46 = vpop.permute.xlu1 %2139 }
 0x37b   : > { %v3890_v47 = vpop.eup %3889  ;;  %3893 = vpow2.f32 %v2174_v45  ;;  %v2165_v49 = vsub.f32 %v4363_v54, %v2140_v46 }
 0x37c   : > { %v3892_v52 = vpop.eup %3891  ;;  %v2205_v53 = vsel %vm2065_vm4, %v3890_v47, 0.0 }
 0x37d   : > { %v2176_v50 = vmul.f32 1.442695, %v2165_v49  ;;  %2206 = vadd.xlane.f32.xlu0 %v2205_v53  ;;  %3672 = vmatprep.mubr.msk.f32.mxu0 %vm2065_vm4, %v3892_v52  ;;  %v2202_v51 = vsel %vm2065_vm4, %v3892_v52, 0.0 }
 0x37e   : > { %v2145_v56 = vpop.permute.xlu1 %2144  ;;  %3673 = vmatmul.mubr.msk.f32.vlgmr.msra.gmra.mrb[14].mxu0 %vm2065_vm4, %v3890_v47  ;;  %2203 = vadd.xlane.f32.xlu1 %v2202_v51 }
 0x37f   : > { %3895 = vpow2.f32 %v2176_v50  ;;  %v2166_v55 = vsub.f32 %v4373_v59, %v2145_v56  ;;  %3847 = vmatpush3.bf16.msra.mxu0 %v4340_v44  ;;  %v2191_v50 = vld [vmem:[#allocation7 + $0x28] sm:$0xff] }
 0x381   : > { %v2178_v57 = vmul.f32 1.442695, %v2166_v55 }
 0x382   : > { %v2150_v54 = vpop.permute.xlu1 %2149 }
 0x383   : > { %3897 = vpow2.f32 %v2178_v57  ;;  %v2167_v60 = vsub.f32 %v4371_v58, %v2150_v54  ;;  %v2192_v54 = vld [vmem:[#allocation7 + $0x30] sm:$0xff] }
 0x385   : > { %v3894_v61 = vpop.eup %3893  ;;  %v2180_v62 = vmul.f32 1.442695, %v2167_v60 }
 0x386   : > { %3679 = vmatprep.mubr.msk.f32.mxu1 %vm2065_vm4, %v3894_v61  ;;  %v2155_v1 = vpop.permute.xlu1 %2154  ;;  %v2208_v2 = vsel %vm2065_vm4, %v3894_v61, 0.0  ;;  %v2733_v61 = vld [vmem:[%s4608_s5] sm:$0xff] }
 0x387   : > { %3899 = vpow2.f32 %v2180_v62  ;;  %v2168_v3 = vsub.f32 %v4381_v0, %v2155_v1  ;;  %2209 = vadd.xlane.f32.xlu0 %v2208_v2  ;;  %3696 = vmatprep.subr.mxu0 %v2733_v61 }
 0x389   : > { %v3896_v6 = vpop.eup %3895  ;;  %v2182_v59 = vmul.f32 1.442695, %v2168_v3 }
 0x38a   : > { %3680 = vmatmul.mubr.msk.f32.vlgmr.msra.gmra.mrb[18].mxu1 %vm2065_vm4, %v3896_v6  ;;  %v2160_v44 = vpop.permute.xlu1 %2159  ;;  %v2211_v8 = vsel %vm2065_vm4, %v3896_v6, 0.0  ;;  %v2193_v6 = vld [vmem:[#allocation7 + $0x38] sm:$0xff] }
 0x38b   : > { %3901 = vpow2.f32 %v2182_v59  ;;  %3851 = vmatpush3.bf16.msra.mxu1 %v4344_v48  ;;  %v2169_v58 = vsub.f32 %v4379_v63, %v2160_v44  ;;  %2212 = vadd.xlane.f32.xlu0 %v2211_v8 }
 0x38d   : > { %v3898_v13 = vpop.eup %3897  ;;  %v2184_v17 = vmul.f32 1.442695, %v2169_v58 }
 0x38e   : > { %3686 = vmatprep.mubr.msk.f32.mxu0 %vm2065_vm4, %v3898_v13  ;;  %v2214_v0 = vsel %vm2065_vm4, %v3898_v13, 0.0 }
 0x38f   : > { %3903 = vpow2.f32 %v2184_v17  ;;  %2215 = vadd.xlane.f32.xlu1 %v2214_v0  ;;  %v4546_v0 = vld [vmem:[%s4608_s5 + $0x8] sm:$0xff] }
 0x390   : > { %3905 = vpow2.f32 %v2106_v32 }
 0x391   : > { %v3900_v22 = vpop.eup %3899  ;;  %3907 = vpow2.f32 %v2110_v37 }
 0x392   : > { %3687 = vmatmul.mubr.msk.f32.vlgmr.msra.gmra.mrb[16].mxu0 %vm2065_vm4, %v3900_v22  ;;  %v2217_v23 = vsel %vm2065_vm4, %v3900_v22, 0.0  ;;  %3909 = vpow2.f32 %v2112_v38 }
 0x393   : > { %2218 = vadd.xlane.f32.xlu0 %v2217_v23  ;;  %3911 = vpow2.f32 %v2108_v5  ;;  %3697 = vmatpush3.msra.mxu0 %v2733_v61  ;;  %v2568_v5 = vld [vmem:[#allocation8 + $0x8] sm:$0xff] }
 0x394   : > { %3913 = vpow2.f32 %v2114_v15  ;;  %3701 = vmatprep.subr.mxu0 %v4546_v0 }
 0x395   : > { %v3902_v30 = vpop.eup %3901  ;;  %3915 = vpow2.f32 %v2116_v41 }
 0x396   : > { %3693 = vmatprep.mubr.msk.f32.mxu1 %vm2065_vm4, %v3902_v30  ;;  %v2220_v48 = vsel %vm2065_vm4, %v3902_v30, 0.0  ;;  %3917 = vpow2.f32 %v2118_v42 }
 0x397   : > { %2221 = vadd.xlane.f32.xlu1 %v2220_v48 }
 0x399   : > { %v3904_v63 = vpop.eup %3903 }
 0x39a   : > { %3694 = vmatmul.mubr.msk.f32.vlgmr.msra.gmra.mrb[20].mxu1 %vm2065_vm4, %v3904_v63  ;;  %v2223_v36 = vsel %vm2065_vm4, %v3904_v63, 0.0  ;;  %v3906_v9 = vpop.eup %3905 }
 0x39b   : > { %2224 = vadd.xlane.f32.xlu0 %v2223_v36  ;;  %v3908_v11 = vpop.eup %3907  ;;  %v2194_v4 = vmul.f32 %v3906_v9, %v2186_v14 }
 0x39c   : > { %v3910_v39 = vpop.eup %3909  ;;  %v2196_v25 = vmul.f32 %v3908_v11, %v2188_v20 }
 0x39d   : > { %v3912_v40 = vpop.eup %3911  ;;  %v2197_v24 = vmul.f32 %v3910_v39, %v2189_v43 }
 0x39e   : > { %v2195_v16 = vmul.f32 %v3912_v40, %v2187_v12  ;;  %v3914_v26 = vpop.eup %3913 }
 0x39f   : > { %v2198_v49 = vmul.f32 %v3914_v26, %v2190_v33  ;;  %v3916_v52 = vpop.eup %3915 }
 0x3a0   : > { %v3918_v56 = vpop.eup %3917  ;;  %v2199_v31 = vmul.f32 %v3916_v52, %v2191_v50  ;;  %v3379_v50 = vld [vmem:[%s4608_s5 + $0x10] sm:$0xff] }
 0x3a1   : > { %v2200_v1 = vmul.f32 %v3918_v56, %v2192_v54 }
 0x3a8   : > { %2577 = vperm.xlu1 %3888, %v3906_v9  }
 0x3ac   : > { %2587 = vperm.xlu1 %3888, %v3908_v11   ;;  %v2567_v11 = vld [vmem:[#allocation8] sm:$0xff] }
 0x3b0   : > { %2592 = vperm.xlu1 %3888, %v3910_v39  }
 0x3b1   : > { %2582 = vperm.xlu0 %3887, %v3912_v40  }
 0x40a   : > { %v2207_v18 = vpop.xlane.xlu0 %2206 }
 0x40b   : > { %v2227_v7 = vadd.f32 %v2207_v18, %v2195_v16  ;;  %v2204_v10 = vpop.xlane.xlu1 %2203 }
 0x40c   : > { %v2226_v21 = vadd.f32 %v2204_v10, %v2194_v4  ;;  %v2570_v4 = vld [vmem:[#allocation8 + $0x18] sm:$0xff]  ;;  %v2569_v10 = vld [vmem:[#allocation8 + $0x10] sm:$0xff] }
 0x40d   : > { %2236 = vst.msk [vmem:[#allocation7 + $0x8] sm:$0xff] %vm894_vm3, %v2227_v7 }
 0x40e   : > { %2235 = vst.msk [vmem:[#allocation7] sm:$0xff] %vm894_vm3, %v2226_v21 }
 0x414   : > { %v2210_v27 = vpop.xlane.xlu0 %2209  ;;  %v2651_v45 = vld [vmem:[#allocation7 + $0x8] sm:$0xff] }
 0x415   : > { %v2228_v46 = vadd.f32 %v2210_v27, %v2196_v25  ;;  %3919 = vrcp.f32 %v2651_v45  ;;  %v2650_v47 = vld [vmem:[#allocation7] sm:$0xff] }
 0x416   : > { %3921 = vrcp.f32 %v2650_v47 }
 0x417   : > { %2237 = vst.msk [vmem:[#allocation7 + $0x10] sm:$0xff] %vm894_vm3, %v2228_v46  ;;  %3923 = vpow2.f32 %v2120_v19 }
 0x418   : > { %v2213_v29 = vpop.xlane.xlu0 %2212 }
 0x419   : > { %v2229_v35 = vadd.f32 %v2213_v29, %v2197_v24 }
 0x41b   : > { %2238 = vst.msk [vmem:[#allocation7 + $0x18] sm:$0xff] %vm894_vm3, %v2229_v35  ;;  %v2572_v35 = vld [vmem:[#allocation8 + $0x28] sm:$0xff] }
 0x41c   : > { %v2216_v53 = vpop.xlane.xlu1 %2215 }
 0x41d   : > { %v2230_v51 = vadd.f32 %v2216_v53, %v2198_v49 }
 0x41e   : > { %v2652_v55 = vld [vmem:[#allocation7 + $0x10] sm:$0xff] }
 0x41f   : > { %v3920_v28 = vpop.eup %3919  ;;  %2239 = vst.msk [vmem:[#allocation7 + $0x20] sm:$0xff] %vm894_vm3, %v2230_v51  ;;  %3925 = vrcp.f32 %v2652_v55 }
 0x420   : > { %v3922_v34 = vpop.eup %3921  ;;  %v2219_v57 = vpop.xlane.xlu0 %2218  ;;  %2681 = vperm.xlu0 %3887, %v3920_v28  }
 0x421   : > { %v2231_v60 = vadd.f32 %v2219_v57, %v2199_v31  ;;  %2676 = vperm.xlu1 %3888, %v3922_v34   ;;  %v3924_v2 = vpop.eup %3923 }
 0x422   : > { %v2653_v62 = vld [vmem:[#allocation7 + $0x18] sm:$0xff]  ;;  %v2201_v8 = vmul.f32 %v3924_v2, %v2193_v6 }
 0x423   : > { %2240 = vst.msk [vmem:[#allocation7 + $0x28] sm:$0xff] %vm894_vm3, %v2231_v60  ;;  %3927 = vrcp.f32 %v2653_v62  ;;  %v2573_v60 = vld [vmem:[#allocation8 + $0x30] sm:$0xff]  ;;  %v2574_v6 = vld [vmem:[#allocation8 + $0x38] sm:$0xff] }
 0x424   : > { %v2222_v3 = vpop.xlane.xlu1 %2221  ;;  %2602 = vperm.xlu0 %3887, %v3916_v52   ;;  %v2571_v52 = vld [vmem:[#allocation8 + $0x20] sm:$0xff] }
 0x425   : > { %v2232_v59 = vadd.f32 %v2222_v3, %v2200_v1  ;;  %2597 = vperm.xlu1 %3888, %v3914_v26  }
 0x426   : > { %v2654_v44 = vld [vmem:[#allocation7 + $0x20] sm:$0xff] }
 0x427   : > { %2241 = vst.msk [vmem:[#allocation7 + $0x30] sm:$0xff] %vm894_vm3, %v2232_v59  ;;  %3929 = vrcp.f32 %v2654_v44  ;;  %v3382_v59 = vld [vmem:[%s4608_s5 + $0x18] sm:$0xff] }
 0x428   : > { %v2225_v58 = vpop.xlane.xlu0 %2224  ;;  %v2578_v38 = vpop.permute.xlu1 %2577 }
 0x429   : > { %v3926_v13 = vpop.eup %3925  ;;  %v2233_v17 = vadd.f32 %v2225_v58, %v2201_v8  ;;  %v2615_v40 = vmul.f32 %v2578_v38, %v2567_v11  ;;  %v3373_v11 = vld [vmem:[%s4612_s9] ss:$0 sm:$0xff] }
 0x42a   : > { %2686 = vperm.xlu1 %3888, %v3926_v13   ;;  %v2655_v22 = vld [vmem:[#allocation7 + $0x28] sm:$0xff] }
 0x42b   : > { %2242 = vst.msk [vmem:[#allocation7 + $0x38] sm:$0xff] %vm894_vm3, %v2233_v17  ;;  %3931 = vrcp.f32 %v2655_v22 }
 0x42c   : > { %v2588_v15 = vpop.permute.xlu1 %2587 }
 0x42d   : > { %v3928_v23 = vpop.eup %3927  ;;  %v2617_v41 = vmul.f32 %v2588_v15, %v2569_v10 }
 0x42e   : > { %2607 = vperm.xlu1 %3888, %v3918_v56   ;;  %2691 = vperm.xlu0 %3887, %v3928_v23   ;;  %v2656_v30 = vld [vmem:[#allocation7 + $0x30] sm:$0xff] }
 0x42f   : > { %3933 = vrcp.f32 %v2656_v30 }
 0x430   : > { %v2583_v9 = vpop.permute.xlu0 %2582  ;;  %v2593_v7 = vpop.permute.xlu1 %2592 }
 0x431   : > { %v3930_v48 = vpop.eup %3929  ;;  %v2616_v39 = vmul.f32 %v2583_v9, %v2568_v5  ;;  %v2618_v21 = vmul.f32 %v2593_v7, %v2570_v4  ;;  %v2723_v9 = vld [vmem:[#allocation2 + $0x8] sm:$0xff] }
 0x432   : > { %2696 = vperm.xlu1 %3888, %v3930_v48   ;;  %2612 = vperm.xlu0 %3887, %v3924_v2   ;;  %v2657_v63 = vld [vmem:[#allocation7 + $0x38] sm:$0xff] }
 0x433   : > { %3935 = vrcp.f32 %v2657_v63 }
 0x435   : > { %v3932_v32 = vpop.eup %3931 }
 0x436   : > { %2701 = vperm.xlu0 %3887, %v3932_v32  }
 0x439   : > { %v3934_v36 = vpop.eup %3933 }
 0x43a   : > { %2706 = vperm.xlu1 %3888, %v3934_v36  }
 0x43d   : > { %v3936_v37 = vpop.eup %3935 }
 0x43e   : > { %2711 = vperm.xlu0 %3887, %v3936_v37  }
 0x451   : > { %v3674_v12 = vpop.f32.mrb[14].mxu0 }
 0x452   : > { %v2624_v14 = vadd.f32 %v3674_v12, %v2616_v39  ;;  %v2315_v16 = vpop.f32.mrb[15].mxu0  ;;  %v2722_v39 = vld [vmem:[#allocation2] sm:$0xff] }
 0x453   : > { %v2623_v18 = vadd.f32 %v2615_v40, %v2315_v16  ;;  %v2732_v40 = vadd.f32 %v3373_v11, %v2723_v9 }
 0x454   : > { %2632 = vst.msk [vmem:[#allocation8 + $0x8] sm:$0xff] %vm618_vm1, %v2624_v14  ;;  %v2731_v14 = vadd.f32 %v3373_v11, %v2722_v39 }
 0x455   : > { %2631 = vst.msk [vmem:[#allocation8] sm:$0xff] %vm618_vm1, %v2623_v18 }
 0x45b   : > { %v2667_v29 = vld [vmem:[#allocation8 + $0x8] sm:$0xff] }
 0x45c   : > { %v2666_v24 = vld [vmem:[#allocation8] sm:$0xff] }
 0x45d   : > { %v3681_v42 = vpop.f32.mrb[18].mxu1 }
 0x45e   : > { %v2626_v20 = vadd.f32 %v3681_v42, %v2618_v21  ;;  %v2396_v25 = vpop.f32.mrb[19].mxu1 }
 0x45f   : > { %v2625_v27 = vadd.f32 %v2617_v41, %v2396_v25 }
 0x460   : > { %2634 = vst.msk [vmem:[#allocation8 + $0x18] sm:$0xff] %vm618_vm1, %v2626_v20 }
 0x461   : > { %2633 = vst.msk [vmem:[#allocation8 + $0x10] sm:$0xff] %vm618_vm1, %v2625_v27 }
 0x465   : > { %v3688_v43 = vpop.f32.mrb[16].mxu0 }
 0x466   : > { %v2477_v45 = vpop.f32.mrb[17].mxu0 }
 0x467   : > { %v2669_v62 = vld [vmem:[#allocation8 + $0x18] sm:$0xff] }
 0x468   : > { %v2668_v34 = vld [vmem:[#allocation8 + $0x10] sm:$0xff] }
 0x46d   : > { %v3695_v46 = vpop.f32.mrb[20].mxu1 }
 0x46e   : > { %v2558_v47 = vpop.f32.mrb[21].mxu1 }
 0x49f   : > { %v2682_v19 = vpop.permute.xlu0 %2681 }
 0x4a0   : > { %v2677_v26 = vpop.permute.xlu1 %2676  ;;  %v2715_v49 = vmul.f32 %v2682_v19, %v2667_v29 }
 0x4a1   : > { %v2714_v33 = vmul.f32 %v2677_v26, %v2666_v24 }
 0x4a3   : > { %3698 = vmatprep.mubr.msk.f32.mxu0 %vm618_vm1, %v2714_v33  ;;  %v2603_v53 = vpop.permute.xlu0 %2602 }
 0x4a4   : > { %v2620_v51 = vmul.f32 %v2603_v53, %v2572_v35  ;;  %v2598_v56 = vpop.permute.xlu1 %2597  ;;  %3699 = vmatmul.mubr.msk.f32.vlgmr.msra.gmra.mrb[18].mxu0 %vm618_vm1, %v2715_v49  ;;  %v3385_v49 = vld [vmem:[%s4613_s10] ss:$0 sm:$0xff] }
 0x4a5   : > { %v2619_v55 = vmul.f32 %v2598_v56, %v2571_v52  ;;  %3702 = vmatpush3.msra.mxu0 %v4546_v0  ;;  %v3386_v53 = vld [vmem:[%s4614_s11] ss:$0 sm:$0xff] }
 0x4a6   : > { %v2628_v28 = vadd.f32 %v3688_v43, %v2620_v51  ;;  %3706 = vmatprep.subr.mxu0 %v3379_v50 }
 0x4a7   : > { %v2627_v31 = vadd.f32 %v2619_v55, %v2477_v45 }
 0x4a8   : > { %2636 = vst.msk [vmem:[#allocation8 + $0x28] sm:$0xff] %vm618_vm1, %v2628_v28 }
 0x4a9   : > { %2635 = vst.msk [vmem:[#allocation8 + $0x20] sm:$0xff] %vm618_vm1, %v2627_v31  ;;  %v2687_v57 = vpop.permute.xlu1 %2686 }
 0x4aa   : > { %v2716_v54 = vmul.f32 %v2687_v57, %v2668_v34 }
 0x4ac   : > { %3703 = vmatprep.mubr.msk.f32.mxu0 %vm618_vm1, %v2716_v54 }
 0x4ad   : > { %v2608_v61 = vpop.permute.xlu1 %2607  ;;  %v2692_v1 = vpop.permute.xlu0 %2691 }
 0x4ae   : > { %v2621_v2 = vmul.f32 %v2608_v61, %v2573_v60  ;;  %v2717_v3 = vmul.f32 %v2692_v1, %v2669_v62 }
 0x4af   : > { %v2671_v23 = vld [vmem:[#allocation8 + $0x28] sm:$0xff] }
 0x4b0   : > { %v2629_v44 = vadd.f32 %v2621_v2, %v2558_v47  ;;  %3704 = vmatmul.mubr.msk.f32.vlgmr.msra.gmra.mrb[18].mxu0 %vm618_vm1, %v2717_v3  ;;  %v2670_v8 = vld [vmem:[#allocation8 + $0x20] sm:$0xff] }
 0x4b1   : > { %3707 = vmatpush3.msra.mxu0 %v3379_v50  ;;  %v2697_v58 = vpop.permute.xlu1 %2696  ;;  %v2613_v13 = vpop.permute.xlu0 %2612 }
 0x4b2   : > { %2637 = vst.msk [vmem:[#allocation8 + $0x30] sm:$0xff] %vm618_vm1, %v2629_v44  ;;  %v2718_v17 = vmul.f32 %v2697_v58, %v2670_v8  ;;  %v2622_v0 = vmul.f32 %v2613_v13, %v2574_v6  ;;  %3711 = vmatprep.subr.mxu0 %v3382_v59 }
 0x4b4   : > { %v2630_v22 = vadd.f32 %v3695_v46, %v2622_v0  ;;  %3708 = vmatprep.mubr.msk.f32.mxu0 %vm618_vm1, %v2718_v17 }
 0x4b5   : > { %v2702_v30 = vpop.permute.xlu0 %2701 }
 0x4b6   : > { %2638 = vst.msk [vmem:[#allocation8 + $0x38] sm:$0xff] %vm618_vm1, %v2630_v22  ;;  %v2719_v48 = vmul.f32 %v2702_v30, %v2671_v23 }
 0x4b8   : > { %3709 = vmatmul.mubr.msk.f32.vlgmr.msra.gmra.mrb[18].mxu0 %vm618_vm1, %v2719_v48 }
 0x4b9   : > { %3712 = vmatpush3.msra.mxu0 %v3382_v59  ;;  %v2672_v63 = vld [vmem:[#allocation8 + $0x30] sm:$0xff]  ;;  %v2707_v32 = vpop.permute.xlu1 %2706 }
 0x4ba   : > { %v2720_v36 = vmul.f32 %v2707_v32, %v2672_v63 }
 0x4bc   : > { %3713 = vmatprep.mubr.msk.f32.mxu0 %vm618_vm1, %v2720_v36 }
 0x4bd   : > { %v2673_v37 = vld [vmem:[#allocation8 + $0x38] sm:$0xff]  ;;  %v2712_v38 = vpop.permute.xlu0 %2711 }
 0x4be   : > { %v2721_v5 = vmul.f32 %v2712_v38, %v2673_v37 }
 0x4c0   : > { %3714 = vmatmul.mubr.msk.f32.vlgmr.msra.gmra.mrb[18].mxu0 %vm618_vm1, %v2721_v5 }
 0x593   : > { %v3715_v12 = vpop.f32.mrb[18].mxu0 }
 0x594   : > { %v3852_v16 = vadd.f32 %v3715_v12, %v2732_v40  ;;  %v3061_v15 = vpop.f32.mrb[19].mxu0 }
 0x595   : > { %v3853_v18 = vadd.f32 %v3061_v15, %v2731_v14 }
 0x596   : > { %v3075_v4 = vsel %vm523_vm0, %v3852_v16, 0.0 }
 0x597   : > { %3076 = vadd.xlane.f32.xlu0 %v3075_v4  ;;  %v3072_v7 = vsel %vm523_vm0, %v3853_v18, 0.0 }
 0x598   : > { %3073 = vadd.xlane.f32.xlu1 %v3072_v7 }
 0x624   : > { %v3077_v10 = vpop.xlane.xlu0 %3076 }
 0x625   : > { %v3080_v21 = vmul.f32 0.03125, %v3077_v10  ;;  %v3074_v41 = vpop.xlane.xlu1 %3073 }
 0x626   : > { %v3079_v42 = vmul.f32 0.03125, %v3074_v41 }
 0x627   : > { %v3082_v20 = vsub.f32 %v3852_v16, %v3080_v21 }
 0x628   : > { %v3081_v25 = vsub.f32 %v3853_v18, %v3079_v42 }
 0x629   : > { %v3084_v45 = vmul.f32 %v3082_v20, %v3082_v20 }
 0x62a   : > { %v3083_v27 = vmul.f32 %v3081_v25, %v3081_v25 }
 0x62b   : > { %v3088_v46 = vsel %vm523_vm0, %v3084_v45, 0.0 }
 0x62c   : > { %v3085_v43 = vsel %vm523_vm0, %v3083_v27, 0.0 }
 0x62d   : > { %3086 = vadd.xlane.f32.xlu0 %v3085_v43 }
 0x631   : > { %3089 = vadd.xlane.f32.xlu0 %v3088_v46 }
 0x6ba   : > { %v3087_v47 = vpop.xlane.xlu0 %3086 }
 0x6bb   : > { %v3091_v19 = vmul.f32 0.03125, %v3087_v47 }
 0x6bd   : > { %v3093_v24 = vadd.f32 1e-05, %v3091_v19 }
 0x6be   : > { %v3090_v26 = vpop.xlane.xlu0 %3089 }
 0x6bf   : > { %3937 = vrsqrt.f32 %v3093_v24  ;;  %v3092_v29 = vmul.f32 0.03125, %v3090_v26 }
 0x6c1   : > { %v3094_v33 = vadd.f32 1e-05, %v3092_v29 }
 0x6c3   : > { %3939 = vrsqrt.f32 %v3094_v33 }
 0x6c9   : > { %v3938_v35 = vpop.eup %3937 }
 0x6ca   : > { %v3097_v52 = vmul.f32 %v3938_v35, %v3081_v25 }
 0x6cc   : > { %v3106_v50 = vmul.f32 %v3385_v49, %v3097_v52 }
 0x6cd   : > { %v3940_v51 = vpop.eup %3939 }
 0x6ce   : > { %v3098_v56 = vmul.f32 %v3940_v51, %v3082_v20  ;;  %v3115_v55 = vadd.f32 %v3386_v53, %v3106_v50 }
 0x6d0   : > { %3117 = vxpose.xlu1.b32.start [1/2] (short) (narrow) %v3115_v55, 32  ;;  %v3107_v28 = vmul.f32 %v3385_v49, %v3098_v56 }
 0x6d2   : > { %v3116_v31 = vadd.f32 %v3386_v53, %v3107_v28 }
 0x6d4   : > { %3118 = vxpose.xlu1.b32.end [2/2] (short) (narrow) %v3116_v31, 32 }
 0x750   : > { %v3133_v34 = vpop.trf.xlu1 }
 0x751   : > { %3149 = vst.msk [vmem:[%s482_s28] sm:$0xff] %vm2065_vm4, %v3133_v34 }
 0x754   : > { %v3134_v57 = vpop.trf.xlu1 }
 0x755   : > { %3150 = vst.msk [vmem:[%s482_s28 + $0x8] sm:$0xff] %vm2065_vm4, %v3134_v57 }
 0x758   : > { %v3135_v54 = vpop.trf.xlu1 }
 0x759   : > { %3151 = vst.msk [vmem:[%s482_s28 + $0x10] sm:$0xff] %vm2065_vm4, %v3135_v54 }
 0x75c   : > { %v3136_v60 = vpop.trf.xlu1 }
 0x75d   : > { %3152 = vst.msk [vmem:[%s482_s28 + $0x18] sm:$0xff] %vm2065_vm4, %v3136_v60 }
 0x75e PF: > { %s22_s23 = sadd.s32 1, %s3963_s23   ;;  %s4618_s21 = smov %s3959_s22 }
 0x75f   : > { %p19_p5 = scmp.ge.s32.totalorder %s22_s23, 4   ;;  %s4619_s22 = smov %s4621_s24 }
 0x761   :  { %21 = sbr.rel (!%p19_p5) target bundleno = 2 (0x2), region = 139 }

</bundles_post_ra>
